<compile_context>
chip_gen: v7x
topology: tpu7x:2x2x1
jax: 0.10.0
libtpu: 0.0.40
codegen_flags: <defaults>
</compile_context>

<pallas_src>
import jax
import jax.numpy as jnp
from jax.experimental import pallas as pl
from jax.experimental.pallas import tpu as pltpu

LANE = 128      # TPU lane width (last dim)
SUBLANE = 16    # use 16 so bf16 sublane packing is clean


def _round_up(n, m):
    return ((n + m - 1) // m) * m


# --------------------------------------------------------------------------
# Kernel: one batch tile through the whole (BN-folded) MLP.
# Weights are bf16, biases f32; dots accumulate in f32 on the MXU.
# --------------------------------------------------------------------------
def sdae_kernel(x_ref,
                w1, b1, w2, b2, w3, b3,     # encoder (BN folded into w2/b2, w3/b3)
                w4, b4, w5, b5, w6, b6,     # decoder (BN folded into w5/b5, w6/b6)
                out_ref):
    f32 = jnp.float32
    bf16 = jnp.bfloat16
    x = x_ref[...]                                       # bf16 tile

    # -------- encoder --------
    h = jnp.dot(x, w1[...], preferred_element_type=f32) + b1[...]
    h = jnp.maximum(h, 0.0)                              # ReLU (Dropout = identity, eval)
    h = jnp.dot(h.astype(bf16), w2[...], preferred_element_type=f32) + b2[...]
    h = jnp.maximum(h, 0.0)
    z = jnp.dot(h.astype(bf16), w3[...], preferred_element_type=f32) + b3[...]
    # sigmoid: EUP exp + approx reciprocal (EUP slot, ~free).
    # Padded bottleneck lanes carry sigmoid(0)=0.5; benign because w4's padded
    # rows are zero.  Mask these lanes if z is ever exposed as an output.
    z = pl.reciprocal(1.0 + jnp.exp(-z), approx=True)

    # -------- decoder --------
    d = jnp.dot(z.astype(bf16), w4[...], preferred_element_type=f32) + b4[...]
    d = jnp.maximum(d, 0.0)
    d = jnp.dot(d.astype(bf16), w5[...], preferred_element_type=f32) + b5[...]
    d = jnp.maximum(d, 0.0)
    y = jnp.dot(d.astype(bf16), w6[...], preferred_element_type=f32) + b6[...]
    out_ref[...] = y.astype(out_ref.dtype)


# --------------------------------------------------------------------------
# Parameter construction (PyTorch-like) + folding/padding glue.
# --------------------------------------------------------------------------
def init_params(key, small, big, input_size, output_size, bottleneck, eps=1e-5):
    assert small == big, "reference module requires small_number == big_number"

    def linear(k, fan_in, fan_out):
        kw, kb = jax.random.split(k)
        bound = 1.0 / float(fan_in) ** 0.5
        w = jax.random.uniform(kw, (fan_in, fan_out), jnp.float32, -bound, bound)
        b = jax.random.uniform(kb, (1, fan_out), jnp.float32, -bound, bound)
        return w, b

    def bn(k, dim):
        kg, kb, km, kv = jax.random.split(k, 4)
        gamma = jax.random.uniform(kg, (1, dim), jnp.float32, 0.5, 1.5)
        beta = 0.1 * jax.random.normal(kb, (1, dim), jnp.float32)
        mean = 0.1 * jax.random.normal(km, (1, dim), jnp.float32)
        var = jax.random.uniform(kv, (1, dim), jnp.float32, 0.5, 1.5)
        scale = gamma / jnp.sqrt(var + eps)
        shift = beta - mean * scale
        return scale, shift

    ks = jax.random.split(key, 10)
    w1, b1 = linear(ks[0], input_size, small)
    s1, t1 = bn(ks[1], small)
    w2, b2 = linear(ks[2], small, big)
    s2, t2 = bn(ks[3], big)
    w3, b3 = linear(ks[4], small, bottleneck)        # receives big(==small) feats
    w4, b4 = linear(ks[5], bottleneck, small)
    s3, t3 = bn(ks[6], small)
    w5, b5 = linear(ks[7], small, big)
    s4, t4 = bn(ks[8], big)
    w6, b6 = linear(ks[9], small, output_size)       # receives big(==small) feats

    return (w1, b1, s1, t1, w2, b2, s2, t2, w3, b3,
            w4, b4, s3, t3, w5, b5, s4, t4, w6, b6)


def _fold_bn_into_next(w, b, scale, shift):
    # (h*scale + shift) @ W + b  ==  h @ (scale.T * W) + (shift @ W + b)
    w_f = w * scale.reshape(-1, 1)
    b_f = shift @ w + b
    return w_f, b_f


def _pad_linear(w, b, in_p, out_p):
    # weights padded + cast to bf16 (MXU operand); biases stay f32.
    w_p = jnp.zeros((in_p, out_p), jnp.bfloat16)
    w_p = w_p.at[:w.shape[0], :w.shape[1]].set(w.astype(jnp.bfloat16))
    b_p = jnp.zeros((1, out_p), jnp.float32).at[:, :b.shape[1]].set(b)
    return (w_p, b_p)


def prepare_params(params):
    """Fold eval-mode BN into the following Linear, pad feature dims to 128,
    and cast weights to bf16."""
    (w1, b1, s1, t1, w2, b2, s2, t2, w3, b3,
     w4, b4, s3, t3, w5, b5, s4, t4, w6, b6) = params

    w2f, b2f = _fold_bn_into_next(w2, b2, s1, t1)
    w3f, b3f = _fold_bn_into_next(w3, b3, s2, t2)
    w5f, b5f = _fold_bn_into_next(w5, b5, s3, t3)
    w6f, b6f = _fold_bn_into_next(w6, b6, s4, t4)

    in_p = _round_up(w1.shape[0], LANE)
    sm_p = _round_up(w1.shape[1], LANE)
    big_p = _round_up(w2.shape[1], LANE)
    bot_p = _round_up(w3.shape[1], LANE)
    out_p = _round_up(w6.shape[1], LANE)

    padded = (
        _pad_linear(w1, b1, in_p, sm_p)
        + _pad_linear(w2f, b2f, sm_p, big_p)
        + _pad_linear(w3f, b3f, big_p, bot_p)
        + _pad_linear(w4, b4, bot_p, sm_p)
        + _pad_linear(w5f, b5f, sm_p, big_p)
        + _pad_linear(w6f, b6f, big_p, out_p)
    )
    dims = {"in_size": w1.shape[0], "in_p": in_p,
            "out_size": w6.shape[1], "out_p": out_p}
    return padded, dims


# --------------------------------------------------------------------------
# Wrapper: grid over batch, weights resident (single-buffered), lane-dense
# activations, explicit VMEM budget + cost estimate.
# --------------------------------------------------------------------------
def sdae_forward(x, padded_params, dims, *, block_batch=1024):
    batch, in_size = x.shape
    assert in_size == dims["in_size"]
    in_p, out_p = dims["in_p"], dims["out_p"]

    # batch tile: multiple of 16 sublanes (bf16 packing), at most padded batch.
    # Keep >= 2 grid steps when the batch allows it (feeds both TCs on v7x).
    bp0 = _round_up(batch, SUBLANE)
    tb = _round_up(min(block_batch, bp0), SUBLANE)
    bp = _round_up(bp0, tb)

    # zero-pad + cast the input once; skipped when already aligned bf16.
    if bp == batch and in_p == in_size and x.dtype == jnp.bfloat16:
        x_p = x
    else:
        x_p = jnp.zeros((bp, in_p), jnp.bfloat16)
        x_p = x_p.at[:batch, :in_size].set(x.astype(jnp.bfloat16))

    grid = (bp // tb,)
    x_spec = pl.BlockSpec((tb, in_p), lambda i: (i, 0))
    out_spec = pl.BlockSpec((tb, out_p), lambda i: (i, 0))

    # --- VMEM budget (bytes) ---------------------------------------------
    weights = padded_params[0::2]
    biases = padded_params[1::2]
    max_feat = max(w.shape[1] for w in weights)
    bytes_w = sum(w.size * 2 for w in weights)          # bf16, single-buffered
    bytes_b = sum(b.size * 4 for b in biases)           # f32
    bytes_x = 2 * tb * in_p * 2                         # double-buffered bf16 in
    bytes_o = 2 * tb * out_p * 4                        # double-buffered f32 out
    bytes_act = 6 * tb * max_feat * 4                   # live f32 intermediates
    vmem_need = bytes_w + bytes_b + bytes_x + bytes_o + bytes_act + (2 << 20)
    vmem_limit = int(min(max(int(vmem_need * 1.25), 16 << 20), 64 << 20))

    # --- cost estimate ------------------------------------------------------
    flops = 2 * bp * sum(w.shape[0] * w.shape[1] for w in weights)
    transcendentals = bp * weights[2].shape[1]          # sigmoid exp
    bytes_accessed = (x_p.size * 2 + bp * out_p * 4 + bytes_w + bytes_b)
    cost = pl.CostEstimate(flops=flops,
                           transcendentals=transcendentals,
                           bytes_accessed=bytes_accessed)

    def _make_call(single_buffer_weights):
        if single_buffer_weights:
            # constant block index -> one resident copy is enough
            w_specs = [pl.BlockSpec(p.shape, lambda i: (0, 0),
                                    pipeline_mode=pl.Buffered(1))
                       for p in padded_params]
        else:
            w_specs = [pl.BlockSpec(p.shape, lambda i: (0, 0))
                       for p in padded_params]
        return pl.pallas_call(
            sdae_kernel,
            out_shape=jax.ShapeDtypeStruct((bp, out_p), jnp.float32),
            grid=grid,
            in_specs=[x_spec] + w_specs,
            out_specs=out_spec,
            compiler_params=pltpu.CompilerParams(
                dimension_semantics=("parallel",),
                vmem_limit_bytes=vmem_limit),
            cost_estimate=cost,
        )

    try:
        out = jax.block_until_ready(_make_call(True)(x_p, *padded_params))
    except Exception:
        # fallback if this jax build rejects pipeline_mode on pallas_call specs
        out = jax.block_until_ready(_make_call(False)(x_p, *padded_params))

    return out[:batch, :dims["out_size"]]


# --------------------------------------------------------------------------
# Plain-JAX reference (unfolded, unpadded, f32) for correctness.
# --------------------------------------------------------------------------
def sdae_reference(x, params):
    (w1, b1, s1, t1, w2, b2, s2, t2, w3, b3,
     w4, b4, s3, t3, w5, b5, s4, t4, w6, b6) = params
    h = jnp.maximum(x @ w1 + b1, 0.0) * s1 + t1
    h = jnp.maximum(h @ w2 + b2, 0.0) * s2 + t2
    z = jax.nn.sigmoid(h @ w3 + b3)
    d = jnp.maximum(z @ w4 + b4, 0.0) * s3 + t3
    d = jnp.maximum(d @ w5 + b5, 0.0) * s4 + t4
    return d @ w6 + b6


if __name__ == "__main__":
    # small synthetic config consistent with the module's forward
    batch = 64
    input_size = 64
    small_number = 32
    big_number = 32          # must equal small_number (see NOTE above)
    bottleneck = 16
    output_size = 64

    key = jax.random.PRNGKey(0)
    kx, kp = jax.random.split(key)
    x = jax.random.normal(kx, (batch, input_size), jnp.float32)
    params = init_params(kp, small_number, big_number,
                         input_size, output_size, bottleneck)

    padded_params, dims = prepare_params(params)

    # block_batch=32 -> 2 grid steps at this demo size (exercises the pipeline
    # and gives both v7x TensorCores work); use the 1024 default in production.
    out = sdae_forward(x, padded_params, dims, block_batch=32)
    out = jax.block_until_ready(out)

    ref = sdae_reference(x, params)
    assert out.shape == (batch, output_size)
    # tolerance covers bf16 matmul operands + EUP approximate reciprocal
    assert jnp.allclose(out, ref, atol=3e-2, rtol=3e-2), "mismatch vs JAX reference"

    print("KERNEL_OK")
</pallas_src>

<mosaic_0001>
module attributes {stable_mosaic.version = 11 : i64} {
  func.func @sdae_kernel(%arg0: i32, %arg1: memref<32x128xbf16, #tpu.memory_space<vmem>>, %arg2: memref<128x128xbf16, #tpu.memory_space<vmem>>, %arg3: memref<1x128xf32, #tpu.memory_space<vmem>>, %arg4: memref<128x128xbf16, #tpu.memory_space<vmem>>, %arg5: memref<1x128xf32, #tpu.memory_space<vmem>>, %arg6: memref<128x128xbf16, #tpu.memory_space<vmem>>, %arg7: memref<1x128xf32, #tpu.memory_space<vmem>>, %arg8: memref<128x128xbf16, #tpu.memory_space<vmem>>, %arg9: memref<1x128xf32, #tpu.memory_space<vmem>>, %arg10: memref<128x128xbf16, #tpu.memory_space<vmem>>, %arg11: memref<1x128xf32, #tpu.memory_space<vmem>>, %arg12: memref<128x128xbf16, #tpu.memory_space<vmem>>, %arg13: memref<1x128xf32, #tpu.memory_space<vmem>>, %arg14: memref<32x128xf32, #tpu.memory_space<vmem>>) attributes {dimension_semantics = [#tpu.dimension_semantics<parallel>], iteration_bounds = array<i64: 2>, scalar_prefetch = 0 : i64, scratch_operands = 0 : i64, tpu.core_type = #tpu.core_type<tc>, window_params = [{transform_indices = @transform_0, window_bounds = array<i64: 32, 128>}, {pipeline_mode = #tpu.pipeline_mode<synchronous>, transform_indices = @transform_1, window_bounds = array<i64: 128, 128>}, {pipeline_mode = #tpu.pipeline_mode<synchronous>, transform_indices = @transform_2, window_bounds = array<i64: 1, 128>}, {pipeline_mode = #tpu.pipeline_mode<synchronous>, transform_indices = @transform_3, window_bounds = array<i64: 128, 128>}, {pipeline_mode = #tpu.pipeline_mode<synchronous>, transform_indices = @transform_4, window_bounds = array<i64: 1, 128>}, {pipeline_mode = #tpu.pipeline_mode<synchronous>, transform_indices = @transform_5, window_bounds = array<i64: 128, 128>}, {pipeline_mode = #tpu.pipeline_mode<synchronous>, transform_indices = @transform_6, window_bounds = array<i64: 1, 128>}, {pipeline_mode = #tpu.pipeline_mode<synchronous>, transform_indices = @transform_7, window_bounds = array<i64: 128, 128>}, {pipeline_mode = #tpu.pipeline_mode<synchronous>, transform_indices = @transform_8, window_bounds = array<i64: 1, 128>}, {pipeline_mode = #tpu.pipeline_mode<synchronous>, transform_indices = @transform_9, window_bounds = array<i64: 128, 128>}, {pipeline_mode = #tpu.pipeline_mode<synchronous>, transform_indices = @transform_10, window_bounds = array<i64: 1, 128>}, {pipeline_mode = #tpu.pipeline_mode<synchronous>, transform_indices = @transform_11, window_bounds = array<i64: 128, 128>}, {pipeline_mode = #tpu.pipeline_mode<synchronous>, transform_indices = @transform_12, window_bounds = array<i64: 1, 128>}, {transform_indices = @transform_13, window_bounds = array<i64: 32, 128>}]} {
    %c0 = arith.constant 0 : index
    %c0_0 = arith.constant 0 : index
    %0 = vector.load %arg1[%c0, %c0_0] : memref<32x128xbf16, #tpu.memory_space<vmem>>, vector<32x128xbf16>
    %c0_1 = arith.constant 0 : index
    %c0_2 = arith.constant 0 : index
    %1 = vector.load %arg2[%c0_1, %c0_2] : memref<128x128xbf16, #tpu.memory_space<vmem>>, vector<128x128xbf16>
    %cst = arith.constant dense<0.000000e+00> : vector<32x128xf32>
    %2 = tpu.matmul %0, %1, %cst {dimension_numbers = #tpu.dot_dimension_numbers<[1], [0], [0], [1], [0, 0, 1, 1], [], []>} : vector<32x128xbf16>, vector<128x128xbf16>, vector<32x128xf32> -> vector<32x128xf32>
    %c0_3 = arith.constant 0 : index
    %c0_4 = arith.constant 0 : index
    %3 = vector.load %arg3[%c0_3, %c0_4] : memref<1x128xf32, #tpu.memory_space<vmem>>, vector<1x128xf32>
    %4 = vector.broadcast %3 : vector<1x128xf32> to vector<32x128xf32>
    %5 = arith.addf %2, %4 : vector<32x128xf32>
    %cst_5 = arith.constant 0.000000e+00 : f32
    %6 = vector.broadcast %cst_5 : f32 to vector<32x128xf32>
    %7 = arith.maximumf %5, %6 : vector<32x128xf32>
    %8 = arith.truncf %7 : vector<32x128xf32> to vector<32x128xbf16>
    %c0_6 = arith.constant 0 : index
    %c0_7 = arith.constant 0 : index
    %9 = vector.load %arg4[%c0_6, %c0_7] : memref<128x128xbf16, #tpu.memory_space<vmem>>, vector<128x128xbf16>
    %cst_8 = arith.constant dense<0.000000e+00> : vector<32x128xf32>
    %10 = tpu.matmul %8, %9, %cst_8 {dimension_numbers = #tpu.dot_dimension_numbers<[1], [0], [0], [1], [0, 0, 1, 1], [], []>} : vector<32x128xbf16>, vector<128x128xbf16>, vector<32x128xf32> -> vector<32x128xf32>
    %c0_9 = arith.constant 0 : index
    %c0_10 = arith.constant 0 : index
    %11 = vector.load %arg5[%c0_9, %c0_10] : memref<1x128xf32, #tpu.memory_space<vmem>>, vector<1x128xf32>
    %12 = vector.broadcast %11 : vector<1x128xf32> to vector<32x128xf32>
    %13 = arith.addf %10, %12 : vector<32x128xf32>
    %cst_11 = arith.constant 0.000000e+00 : f32
    %14 = vector.broadcast %cst_11 : f32 to vector<32x128xf32>
    %15 = arith.maximumf %13, %14 : vector<32x128xf32>
    %16 = arith.truncf %15 : vector<32x128xf32> to vector<32x128xbf16>
    %c0_12 = arith.constant 0 : index
    %c0_13 = arith.constant 0 : index
    %17 = vector.load %arg6[%c0_12, %c0_13] : memref<128x128xbf16, #tpu.memory_space<vmem>>, vector<128x128xbf16>
    %cst_14 = arith.constant dense<0.000000e+00> : vector<32x128xf32>
    %18 = tpu.matmul %16, %17, %cst_14 {dimension_numbers = #tpu.dot_dimension_numbers<[1], [0], [0], [1], [0, 0, 1, 1], [], []>} : vector<32x128xbf16>, vector<128x128xbf16>, vector<32x128xf32> -> vector<32x128xf32>
    %c0_15 = arith.constant 0 : index
    %c0_16 = arith.constant 0 : index
    %19 = vector.load %arg7[%c0_15, %c0_16] : memref<1x128xf32, #tpu.memory_space<vmem>>, vector<1x128xf32>
    %20 = vector.broadcast %19 : vector<1x128xf32> to vector<32x128xf32>
    %21 = arith.addf %18, %20 : vector<32x128xf32>
    %cst_17 = arith.constant 0.000000e+00 : f32
    %22 = vector.broadcast %cst_17 : f32 to vector<32x128xf32>
    %23 = arith.subf %22, %21 : vector<32x128xf32>
    %24 = math.exp %23 : vector<32x128xf32>
    %cst_18 = arith.constant 1.000000e+00 : f32
    %25 = vector.broadcast %cst_18 : f32 to vector<32x128xf32>
    %26 = arith.addf %25, %24 : vector<32x128xf32>
    %27 = tpu.reciprocal %26 {approx = true} : vector<32x128xf32> -> vector<32x128xf32>
    %28 = arith.truncf %27 : vector<32x128xf32> to vector<32x128xbf16>
    %c0_19 = arith.constant 0 : index
    %c0_20 = arith.constant 0 : index
    %29 = vector.load %arg8[%c0_19, %c0_20] : memref<128x128xbf16, #tpu.memory_space<vmem>>, vector<128x128xbf16>
    %cst_21 = arith.constant dense<0.000000e+00> : vector<32x128xf32>
    %30 = tpu.matmul %28, %29, %cst_21 {dimension_numbers = #tpu.dot_dimension_numbers<[1], [0], [0], [1], [0, 0, 1, 1], [], []>} : vector<32x128xbf16>, vector<128x128xbf16>, vector<32x128xf32> -> vector<32x128xf32>
    %c0_22 = arith.constant 0 : index
    %c0_23 = arith.constant 0 : index
    %31 = vector.load %arg9[%c0_22, %c0_23] : memref<1x128xf32, #tpu.memory_space<vmem>>, vector<1x128xf32>
    %32 = vector.broadcast %31 : vector<1x128xf32> to vector<32x128xf32>
    %33 = arith.addf %30, %32 : vector<32x128xf32>
    %cst_24 = arith.constant 0.000000e+00 : f32
    %34 = vector.broadcast %cst_24 : f32 to vector<32x128xf32>
    %35 = arith.maximumf %33, %34 : vector<32x128xf32>
    %36 = arith.truncf %35 : vector<32x128xf32> to vector<32x128xbf16>
    %c0_25 = arith.constant 0 : index
    %c0_26 = arith.constant 0 : index
    %37 = vector.load %arg10[%c0_25, %c0_26] : memref<128x128xbf16, #tpu.memory_space<vmem>>, vector<128x128xbf16>
    %cst_27 = arith.constant dense<0.000000e+00> : vector<32x128xf32>
    %38 = tpu.matmul %36, %37, %cst_27 {dimension_numbers = #tpu.dot_dimension_numbers<[1], [0], [0], [1], [0, 0, 1, 1], [], []>} : vector<32x128xbf16>, vector<128x128xbf16>, vector<32x128xf32> -> vector<32x128xf32>
    %c0_28 = arith.constant 0 : index
    %c0_29 = arith.constant 0 : index
    %39 = vector.load %arg11[%c0_28, %c0_29] : memref<1x128xf32, #tpu.memory_space<vmem>>, vector<1x128xf32>
    %40 = vector.broadcast %39 : vector<1x128xf32> to vector<32x128xf32>
    %41 = arith.addf %38, %40 : vector<32x128xf32>
    %cst_30 = arith.constant 0.000000e+00 : f32
    %42 = vector.broadcast %cst_30 : f32 to vector<32x128xf32>
    %43 = arith.maximumf %41, %42 : vector<32x128xf32>
    %44 = arith.truncf %43 : vector<32x128xf32> to vector<32x128xbf16>
    %c0_31 = arith.constant 0 : index
    %c0_32 = arith.constant 0 : index
    %45 = vector.load %arg12[%c0_31, %c0_32] : memref<128x128xbf16, #tpu.memory_space<vmem>>, vector<128x128xbf16>
    %cst_33 = arith.constant dense<0.000000e+00> : vector<32x128xf32>
    %46 = tpu.matmul %44, %45, %cst_33 {dimension_numbers = #tpu.dot_dimension_numbers<[1], [0], [0], [1], [0, 0, 1, 1], [], []>} : vector<32x128xbf16>, vector<128x128xbf16>, vector<32x128xf32> -> vector<32x128xf32>
    %c0_34 = arith.constant 0 : index
    %c0_35 = arith.constant 0 : index
    %47 = vector.load %arg13[%c0_34, %c0_35] : memref<1x128xf32, #tpu.memory_space<vmem>>, vector<1x128xf32>
    %48 = vector.broadcast %47 : vector<1x128xf32> to vector<32x128xf32>
    %49 = arith.addf %46, %48 : vector<32x128xf32>
    %c0_36 = arith.constant 0 : index
    %c0_37 = arith.constant 0 : index
    %50 = vector.load %arg14[%c0_36, %c0_37] : memref<32x128xf32, #tpu.memory_space<vmem>>, vector<32x128xf32>
    tpu.vector_store %arg14[%c0_36, %c0_37], %49 {strides = array<i32>} : memref<32x128xf32, #tpu.memory_space<vmem>>, vector<32x128xf32>,
    return
  }
  func.func @transform_0(%arg0: i32) -> (i32, i32) {
    %c0_i32 = arith.constant 0 : i32
    %c0_i32_0 = arith.constant 0 : i32
    return %arg0, %c0_i32 : i32, i32
  }
  func.func @transform_1(%arg0: i32) -> (i32, i32) {
    %c0_i32 = arith.constant 0 : i32
    %c0_i32_0 = arith.constant 0 : i32
    %c0_i32_1 = arith.constant 0 : i32
    return %c0_i32, %c0_i32_0 : i32, i32
  }
  func.func @transform_2(%arg0: i32) -> (i32, i32) {
    %c0_i32 = arith.constant 0 : i32
    %c0_i32_0 = arith.constant 0 : i32
    %c0_i32_1 = arith.constant 0 : i32
    return %c0_i32, %c0_i32_0 : i32, i32
  }
  func.func @transform_3(%arg0: i32) -> (i32, i32) {
    %c0_i32 = arith.constant 0 : i32
    %c0_i32_0 = arith.constant 0 : i32
    %c0_i32_1 = arith.constant 0 : i32
    return %c0_i32, %c0_i32_0 : i32, i32
  }
  func.func @transform_4(%arg0: i32) -> (i32, i32) {
    %c0_i32 = arith.constant 0 : i32
    %c0_i32_0 = arith.constant 0 : i32
    %c0_i32_1 = arith.constant 0 : i32
    return %c0_i32, %c0_i32_0 : i32, i32
  }
  func.func @transform_5(%arg0: i32) -> (i32, i32) {
    %c0_i32 = arith.constant 0 : i32
    %c0_i32_0 = arith.constant 0 : i32
    %c0_i32_1 = arith.constant 0 : i32
    return %c0_i32, %c0_i32_0 : i32, i32
  }
  func.func @transform_6(%arg0: i32) -> (i32, i32) {
    %c0_i32 = arith.constant 0 : i32
    %c0_i32_0 = arith.constant 0 : i32
    %c0_i32_1 = arith.constant 0 : i32
    return %c0_i32, %c0_i32_0 : i32, i32
  }
  func.func @transform_7(%arg0: i32) -> (i32, i32) {
    %c0_i32 = arith.constant 0 : i32
    %c0_i32_0 = arith.constant 0 : i32
    %c0_i32_1 = arith.constant 0 : i32
    return %c0_i32, %c0_i32_0 : i32, i32
  }
  func.func @transform_8(%arg0: i32) -> (i32, i32) {
    %c0_i32 = arith.constant 0 : i32
    %c0_i32_0 = arith.constant 0 : i32
    %c0_i32_1 = arith.constant 0 : i32
    return %c0_i32, %c0_i32_0 : i32, i32
  }
  func.func @transform_9(%arg0: i32) -> (i32, i32) {
    %c0_i32 = arith.constant 0 : i32
    %c0_i32_0 = arith.constant 0 : i32
    %c0_i32_1 = arith.constant 0 : i32
    return %c0_i32, %c0_i32_0 : i32, i32
  }
  func.func @transform_10(%arg0: i32) -> (i32, i32) {
    %c0_i32 = arith.constant 0 : i32
    %c0_i32_0 = arith.constant 0 : i32
    %c0_i32_1 = arith.constant 0 : i32
    return %c0_i32, %c0_i32_0 : i32, i32
  }
  func.func @transform_11(%arg0: i32) -> (i32, i32) {
    %c0_i32 = arith.constant 0 : i32
    %c0_i32_0 = arith.constant 0 : i32
    %c0_i32_1 = arith.constant 0 : i32
    return %c0_i32, %c0_i32_0 : i32, i32
  }
  func.func @transform_12(%arg0: i32) -> (i32, i32) {
    %c0_i32 = arith.constant 0 : i32
    %c0_i32_0 = arith.constant 0 : i32
    %c0_i32_1 = arith.constant 0 : i32
    return %c0_i32, %c0_i32_0 : i32, i32
  }
  func.func @transform_13(%arg0: i32) -> (i32, i32) {
    %c0_i32 = arith.constant 0 : i32
    %c0_i32_0 = arith.constant 0 : i32
    return %arg0, %c0_i32 : i32, i32
  }
}

module attributes {stable_mosaic.version = 11 : i64} {
  func.func @sdae_kernel(%arg0: i32, %arg1: memref<32x128xbf16, #tpu.memory_space<vmem>>, %arg2: memref<128x128xbf16, #tpu.memory_space<vmem>>, %arg3: memref<1x128xf32, #tpu.memory_space<vmem>>, %arg4: memref<128x128xbf16, #tpu.memory_space<vmem>>, %arg5: memref<1x128xf32, #tpu.memory_space<vmem>>, %arg6: memref<128x128xbf16, #tpu.memory_space<vmem>>, %arg7: memref<1x128xf32, #tpu.memory_space<vmem>>, %arg8: memref<128x128xbf16, #tpu.memory_space<vmem>>, %arg9: memref<1x128xf32, #tpu.memory_space<vmem>>, %arg10: memref<128x128xbf16, #tpu.memory_space<vmem>>, %arg11: memref<1x128xf32, #tpu.memory_space<vmem>>, %arg12: memref<128x128xbf16, #tpu.memory_space<vmem>>, %arg13: memref<1x128xf32, #tpu.memory_space<vmem>>, %arg14: memref<32x128xf32, #tpu.memory_space<vmem>>) attributes {dimension_semantics = [#tpu.dimension_semantics<parallel>], iteration_bounds = array<i64: 2>, scalar_prefetch = 0 : i64, scratch_operands = 0 : i64, tpu.core_type = #tpu.core_type<tc>, window_params = [{transform_indices = @transform_0, window_bounds = array<i64: 32, 128>}, {pipeline_mode = #tpu.pipeline_mode<synchronous>, transform_indices = @transform_1, window_bounds = array<i64: 128, 128>}, {pipeline_mode = #tpu.pipeline_mode<synchronous>, transform_indices = @transform_2, window_bounds = array<i64: 1, 128>}, {pipeline_mode = #tpu.pipeline_mode<synchronous>, transform_indices = @transform_3, window_bounds = array<i64: 128, 128>}, {pipeline_mode = #tpu.pipeline_mode<synchronous>, transform_indices = @transform_4, window_bounds = array<i64: 1, 128>}, {pipeline_mode = #tpu.pipeline_mode<synchronous>, transform_indices = @transform_5, window_bounds = array<i64: 128, 128>}, {pipeline_mode = #tpu.pipeline_mode<synchronous>, transform_indices = @transform_6, window_bounds = array<i64: 1, 128>}, {pipeline_mode = #tpu.pipeline_mode<synchronous>, transform_indices = @transform_7, window_bounds = array<i64: 128, 128>}, {pipeline_mode = #tpu.pipeline_mode<synchronous>, transform_indices = @transform_8, window_bounds = array<i64: 1, 128>}, {pipeline_mode = #tpu.pipeline_mode<synchronous>, transform_indices = @transform_9, window_bounds = array<i64: 128, 128>}, {pipeline_mode = #tpu.pipeline_mode<synchronous>, transform_indices = @transform_10, window_bounds = array<i64: 1, 128>}, {pipeline_mode = #tpu.pipeline_mode<synchronous>, transform_indices = @transform_11, window_bounds = array<i64: 128, 128>}, {pipeline_mode = #tpu.pipeline_mode<synchronous>, transform_indices = @transform_12, window_bounds = array<i64: 1, 128>}, {transform_indices = @transform_13, window_bounds = array<i64: 32, 128>}]} {
    %c0 = arith.constant 0 : index
    %c0_0 = arith.constant 0 : index
    %0 = vector.load %arg1[%c0, %c0_0] : memref<32x128xbf16, #tpu.memory_space<vmem>>, vector<32x128xbf16>
    %c0_1 = arith.constant 0 : index
    %c0_2 = arith.constant 0 : index
    %1 = vector.load %arg2[%c0_1, %c0_2] : memref<128x128xbf16, #tpu.memory_space<vmem>>, vector<128x128xbf16>
    %cst = arith.constant dense<0.000000e+00> : vector<32x128xf32>
    %2 = tpu.matmul %0, %1, %cst {dimension_numbers = #tpu.dot_dimension_numbers<[1], [0], [0], [1], [0, 0, 1, 1], [], []>} : vector<32x128xbf16>, vector<128x128xbf16>, vector<32x128xf32> -> vector<32x128xf32>
    %c0_3 = arith.constant 0 : index
    %c0_4 = arith.constant 0 : index
    %3 = vector.load %arg3[%c0_3, %c0_4] : memref<1x128xf32, #tpu.memory_space<vmem>>, vector<1x128xf32>
    %4 = vector.broadcast %3 : vector<1x128xf32> to vector<32x128xf32>
    %5 = arith.addf %2, %4 : vector<32x128xf32>
    %cst_5 = arith.constant 0.000000e+00 : f32
    %6 = vector.broadcast %cst_5 : f32 to vector<32x128xf32>
    %7 = arith.maximumf %5, %6 : vector<32x128xf32>
    %8 = arith.truncf %7 : vector<32x128xf32> to vector<32x128xbf16>
    %c0_6 = arith.constant 0 : index
    %c0_7 = arith.constant 0 : index
    %9 = vector.load %arg4[%c0_6, %c0_7] : memref<128x128xbf16, #tpu.memory_space<vmem>>, vector<128x128xbf16>
    %cst_8 = arith.constant dense<0.000000e+00> : vector<32x128xf32>
    %10 = tpu.matmul %8, %9, %cst_8 {dimension_numbers = #tpu.dot_dimension_numbers<[1], [0], [0], [1], [0, 0, 1, 1], [], []>} : vector<32x128xbf16>, vector<128x128xbf16>, vector<32x128xf32> -> vector<32x128xf32>
    %c0_9 = arith.constant 0 : index
    %c0_10 = arith.constant 0 : index
    %11 = vector.load %arg5[%c0_9, %c0_10] : memref<1x128xf32, #tpu.memory_space<vmem>>, vector<1x128xf32>
    %12 = vector.broadcast %11 : vector<1x128xf32> to vector<32x128xf32>
    %13 = arith.addf %10, %12 : vector<32x128xf32>
    %cst_11 = arith.constant 0.000000e+00 : f32
    %14 = vector.broadcast %cst_11 : f32 to vector<32x128xf32>
    %15 = arith.maximumf %13, %14 : vector<32x128xf32>
    %16 = arith.truncf %15 : vector<32x128xf32> to vector<32x128xbf16>
    %c0_12 = arith.constant 0 : index
    %c0_13 = arith.constant 0 : index
    %17 = vector.load %arg6[%c0_12, %c0_13] : memref<128x128xbf16, #tpu.memory_space<vmem>>, vector<128x128xbf16>
    %cst_14 = arith.constant dense<0.000000e+00> : vector<32x128xf32>
    %18 = tpu.matmul %16, %17, %cst_14 {dimension_numbers = #tpu.dot_dimension_numbers<[1], [0], [0], [1], [0, 0, 1, 1], [], []>} : vector<32x128xbf16>, vector<128x128xbf16>, vector<32x128xf32> -> vector<32x128xf32>
    %c0_15 = arith.constant 0 : index
    %c0_16 = arith.constant 0 : index
    %19 = vector.load %arg7[%c0_15, %c0_16] : memref<1x128xf32, #tpu.memory_space<vmem>>, vector<1x128xf32>
    %20 = vector.broadcast %19 : vector<1x128xf32> to vector<32x128xf32>
    %21 = arith.addf %18, %20 : vector<32x128xf32>
    %cst_17 = arith.constant 0.000000e+00 : f32
    %22 = vector.broadcast %cst_17 : f32 to vector<32x128xf32>
    %23 = arith.subf %22, %21 : vector<32x128xf32>
    %24 = math.exp %23 : vector<32x128xf32>
    %cst_18 = arith.constant 1.000000e+00 : f32
    %25 = vector.broadcast %cst_18 : f32 to vector<32x128xf32>
    %26 = arith.addf %25, %24 : vector<32x128xf32>
    %27 = tpu.reciprocal %26 {approx = true} : vector<32x128xf32> -> vector<32x128xf32>
    %28 = arith.truncf %27 : vector<32x128xf32> to vector<32x128xbf16>
    %c0_19 = arith.constant 0 : index
    %c0_20 = arith.constant 0 : index
    %29 = vector.load %arg8[%c0_19, %c0_20] : memref<128x128xbf16, #tpu.memory_space<vmem>>, vector<128x128xbf16>
    %cst_21 = arith.constant dense<0.000000e+00> : vector<32x128xf32>
    %30 = tpu.matmul %28, %29, %cst_21 {dimension_numbers = #tpu.dot_dimension_numbers<[1], [0], [0], [1], [0, 0, 1, 1], [], []>} : vector<32x128xbf16>, vector<128x128xbf16>, vector<32x128xf32> -> vector<32x128xf32>
    %c0_22 = arith.constant 0 : index
    %c0_23 = arith.constant 0 : index
    %31 = vector.load %arg9[%c0_22, %c0_23] : memref<1x128xf32, #tpu.memory_space<vmem>>, vector<1x128xf32>
    %32 = vector.broadcast %31 : vector<1x128xf32> to vector<32x128xf32>
    %33 = arith.addf %30, %32 : vector<32x128xf32>
    %cst_24 = arith.constant 0.000000e+00 : f32
    %34 = vector.broadcast %cst_24 : f32 to vector<32x128xf32>
    %35 = arith.maximumf %33, %34 : vector<32x128xf32>
    %36 = arith.truncf %35 : vector<32x128xf32> to vector<32x128xbf16>
    %c0_25 = arith.constant 0 : index
    %c0_26 = arith.constant 0 : index
    %37 = vector.load %arg10[%c0_25, %c0_26] : memref<128x128xbf16, #tpu.memory_space<vmem>>, vector<128x128xbf16>
    %cst_27 = arith.constant dense<0.000000e+00> : vector<32x128xf32>
    %38 = tpu.matmul %36, %37, %cst_27 {dimension_numbers = #tpu.dot_dimension_numbers<[1], [0], [0], [1], [0, 0, 1, 1], [], []>} : vector<32x128xbf16>, vector<128x128xbf16>, vector<32x128xf32> -> vector<32x128xf32>
    %c0_28 = arith.constant 0 : index
    %c0_29 = arith.constant 0 : index
    %39 = vector.load %arg11[%c0_28, %c0_29] : memref<1x128xf32, #tpu.memory_space<vmem>>, vector<1x128xf32>
    %40 = vector.broadcast %39 : vector<1x128xf32> to vector<32x128xf32>
    %41 = arith.addf %38, %40 : vector<32x128xf32>
    %cst_30 = arith.constant 0.000000e+00 : f32
    %42 = vector.broadcast %cst_30 : f32 to vector<32x128xf32>
    %43 = arith.maximumf %41, %42 : vector<32x128xf32>
    %44 = arith.truncf %43 : vector<32x128xf32> to vector<32x128xbf16>
    %c0_31 = arith.constant 0 : index
    %c0_32 = arith.constant 0 : index
    %45 = vector.load %arg12[%c0_31, %c0_32] : memref<128x128xbf16, #tpu.memory_space<vmem>>, vector<128x128xbf16>
    %cst_33 = arith.constant dense<0.000000e+00> : vector<32x128xf32>
    %46 = tpu.matmul %44, %45, %cst_33 {dimension_numbers = #tpu.dot_dimension_numbers<[1], [0], [0], [1], [0, 0, 1, 1], [], []>} : vector<32x128xbf16>, vector<128x128xbf16>, vector<32x128xf32> -> vector<32x128xf32>
    %c0_34 = arith.constant 0 : index
    %c0_35 = arith.constant 0 : index
    %47 = vector.load %arg13[%c0_34, %c0_35] : memref<1x128xf32, #tpu.memory_space<vmem>>, vector<1x128xf32>
    %48 = vector.broadcast %47 : vector<1x128xf32> to vector<32x128xf32>
    %49 = arith.addf %46, %48 : vector<32x128xf32>
    %c0_36 = arith.constant 0 : index
    %c0_37 = arith.constant 0 : index
    %50 = vector.load %arg14[%c0_36, %c0_37] : memref<32x128xf32, #tpu.memory_space<vmem>>, vector<32x128xf32>
    tpu.vector_store %arg14[%c0_36, %c0_37], %49 {strides = array<i32>} : memref<32x128xf32, #tpu.memory_space<vmem>>, vector<32x128xf32>,
    return
  }
  func.func @transform_0(%arg0: i32) -> (i32, i32) {
    %c0_i32 = arith.constant 0 : i32
    %c0_i32_0 = arith.constant 0 : i32
    return %arg0, %c0_i32 : i32, i32
  }
  func.func @transform_1(%arg0: i32) -> (i32, i32) {
    %c0_i32 = arith.constant 0 : i32
    %c0_i32_0 = arith.constant 0 : i32
    %c0_i32_1 = arith.constant 0 : i32
    return %c0_i32, %c0_i32_0 : i32, i32
  }
  func.func @transform_2(%arg0: i32) -> (i32, i32) {
    %c0_i32 = arith.constant 0 : i32
    %c0_i32_0 = arith.constant 0 : i32
    %c0_i32_1 = arith.constant 0 : i32
    return %c0_i32, %c0_i32_0 : i32, i32
  }
  func.func @transform_3(%arg0: i32) -> (i32, i32) {
    %c0_i32 = arith.constant 0 : i32
    %c0_i32_0 = arith.constant 0 : i32
    %c0_i32_1 = arith.constant 0 : i32
    return %c0_i32, %c0_i32_0 : i32, i32
  }
  func.func @transform_4(%arg0: i32) -> (i32, i32) {
    %c0_i32 = arith.constant 0 : i32
    %c0_i32_0 = arith.constant 0 : i32
    %c0_i32_1 = arith.constant 0 : i32
    return %c0_i32, %c0_i32_0 : i32, i32
  }
  func.func @transform_5(%arg0: i32) -> (i32, i32) {
    %c0_i32 = arith.constant 0 : i32
    %c0_i32_0 = arith.constant 0 : i32
    %c0_i32_1 = arith.constant 0 : i32
    return %c0_i32, %c0_i32_0 : i32, i32
  }
  func.func @transform_6(%arg0: i32) -> (i32, i32) {
    %c0_i32 = arith.constant 0 : i32
    %c0_i32_0 = arith.constant 0 : i32
    %c0_i32_1 = arith.constant 0 : i32
    return %c0_i32, %c0_i32_0 : i32, i32
  }
  func.func @transform_7(%arg0: i32) -> (i32, i32) {
    %c0_i32 = arith.constant 0 : i32
    %c0_i32_0 = arith.constant 0 : i32
    %c0_i32_1 = arith.constant 0 : i32
    return %c0_i32, %c0_i32_0 : i32, i32
  }
  func.func @transform_8(%arg0: i32) -> (i32, i32) {
    %c0_i32 = arith.constant 0 : i32
    %c0_i32_0 = arith.constant 0 : i32
    %c0_i32_1 = arith.constant 0 : i32
    return %c0_i32, %c0_i32_0 : i32, i32
  }
  func.func @transform_9(%arg0: i32) -> (i32, i32) {
    %c0_i32 = arith.constant 0 : i32
    %c0_i32_0 = arith.constant 0 : i32
    %c0_i32_1 = arith.constant 0 : i32
    return %c0_i32, %c0_i32_0 : i32, i32
  }
  func.func @transform_10(%arg0: i32) -> (i32, i32) {
    %c0_i32 = arith.constant 0 : i32
    %c0_i32_0 = arith.constant 0 : i32
    %c0_i32_1 = arith.constant 0 : i32
    return %c0_i32, %c0_i32_0 : i32, i32
  }
  func.func @transform_11(%arg0: i32) -> (i32, i32) {
    %c0_i32 = arith.constant 0 : i32
    %c0_i32_0 = arith.constant 0 : i32
    %c0_i32_1 = arith.constant 0 : i32
    return %c0_i32, %c0_i32_0 : i32, i32
  }
  func.func @transform_12(%arg0: i32) -> (i32, i32) {
    %c0_i32 = arith.constant 0 : i32
    %c0_i32_0 = arith.constant 0 : i32
    %c0_i32_1 = arith.constant 0 : i32
    return %c0_i32, %c0_i32_0 : i32, i32
  }
  func.func @transform_13(%arg0: i32) -> (i32, i32) {
    %c0_i32 = arith.constant 0 : i32
    %c0_i32_0 = arith.constant 0 : i32
    return %arg0, %c0_i32 : i32, i32
  }
}

</mosaic_0001>

<bundles_post_ra>
// kernel: tpu_custom_call.1
= control target key start
LH: loop header
LB: loop body
LE: loop exit
PB: predicated region body
PF: predicated region fallthrough
CT: control target
= control target key end

     0   :  { %s2649_s0 = inlined_call_operand.hbm [shape: bf16[64,128], index: 0, kind: input, shape index: {}]   ;;  %s2650_s1 = inlined_call_operand.hbm [shape: bf16[128,128], index: 1, kind: input, shape index: {}]   ;;  %s2651_s2 = inlined_call_operand.vmem [shape: f32[1,128], index: 2, kind: input, shape index: {}]   ;;  %s2652_s3 = inlined_call_operand.hbm [shape: bf16[128,128], index: 3, kind: input, shape index: {}]   ;;  %s2653_s4 = inlined_call_operand.vmem [shape: f32[1,128], index: 4, kind: input, shape index: {}]   ;;  %s2654_s5 = inlined_call_operand.hbm [shape: bf16[128,128], index: 5, kind: input, shape index: {}]   ;;  %s2655_s6 = inlined_call_operand.vmem [shape: f32[1,128], index: 6, kind: input, shape index: {}]   ;;  %s2656_s7 = inlined_call_operand.hbm [shape: bf16[128,128], index: 7, kind: input, shape index: {}]   ;;  %s2657_s8 = inlined_call_operand.vmem [shape: f32[1,128], index: 8, kind: input, shape index: {}]   ;;  %s2658_s9 = inlined_call_operand.hbm [shape: bf16[128,128], index: 9, kind: input, shape index: {}]   ;;  %s2659_s10 = inlined_call_operand.vmem [shape: f32[1,128], index: 10, kind: input, shape index: {}]   ;;  %s2660_s11 = inlined_call_operand.hbm [shape: bf16[128,128], index: 11, kind: input, shape index: {}]   ;;  %s2661_s12 = inlined_call_operand.vmem [shape: f32[1,128], index: 12, kind: input, shape index: {}]   ;;  %s2662_s13 = inlined_call_operand.hbm [shape: f32[64,128], index: 13, kind: output, shape index: {}]  }
   0x1   :  { %2668 = sst [smem:[#allocation20_spill]] %s2650_s1 }
   0x2   :  { %2669 = sst [smem:[#allocation21_spill]] %s2655_s6 }
   0x3   :  { %2670 = sst [smem:[#allocation22_spill]] %s2657_s8 }
   0x4   :  { %2671 = sst [smem:[#allocation23_spill]] %s2659_s10 }
   0x5   :  { %2672 = sst [smem:[#allocation24_spill]] %s2661_s12 }
   0x6   :  { %2673 = sst [smem:[#allocation25_spill]] %s2662_s13 }
   0x7   :  { %18 = vsyncpa [#allocation3], 0 }
   0x8   :  { %20 = vsyncpa [#allocation3 + $0x1], 0 }
   0x9   :  { %21 = vsyncpa [#allocation6], 0 }
   0xa   :  { %22 = vsyncpa [#allocation9], 0 }
   0xb   :  { %23 = vsyncpa [#allocation12], 0 }
   0xc   :  { %24 = vsyncpa [#allocation4], 0 }
   0xd   :  { %26 = vsyncpa [#allocation4 + $0x1], 0  ;;  %s2280_s25 = smov 0   ;;  %s2282_s26 = smov 0  }
   0xe   :  { %s2284_s27 = smov 0   ;;  %s2286_s28 = smov 0  }
   0xf LB: > { %s2198_s29 = smov [#allocation5]   ;;  %s2301_s14 = sadd.s32 4294967295, %s2196_s28   ;;  %s2196_s28 = sphi %s2286_s28, %s2703_s28   ;;  %s2192_s27 = sphi %s2284_s27, %s2702_s27   ;;  %s2188_s26 = sphi %s2282_s26, %s2701_s26   ;;  %s2184_s25 = sphi %s2280_s25, %s2700_s25  }
  0x10   : > { %s353_s30 = sshll.u32 %s2198_s29, 4  ;;  %p1480_p0 = scmp.ge.s32.totalorder %s2196_s28, 1  ;;  %s2306_s30 = int_to_ptr.vmem [resolvable:$true] %s353_s30 }
  0x11   : > { %p2664_p1 = scmp.eq.s32.totalorder %s2301_s14, 0  ;;  %p341_p2 = scmp.lt.s32.totalorder %s2196_s28, 3 }
  0x12   : > { %s2199_s16 = smov [#allocation8]   ;;  %s2200_s19 = smov [#allocation11]  }
  0x13   : > { %p2308_p3 = pnand %p1480_p0, %p341_p2  ;;  %s385_s17 = sshll.u32 %s2199_s16, 4  ;;  %s2321_s17 = int_to_ptr.vmem [resolvable:$true] %s385_s17 }
  0x14   : > { %s417_s20 = sshll.u32 %s2200_s19, 4  ;;  %s2676_s1 = sld [smem:[#allocation20_spill]]  ;;  %s2323_s20 = int_to_ptr.vmem [resolvable:$true] %s417_s20 }
  0x15   : > { %s2674_s15 = scalar_select %p2308_p3, 1, 0 }
  0x16   : > { %p1771_p5 = pneg %p2308_p3 }
  0x18   : > { %p2317_p6 = pnand %p1771_p5, %p2664_p1 }
  0x1a   : > { %s1920_s23 = scalar_lea.hbm %s2676_s1, 1024  ;;  %p2333_p8 = pneg %p2317_p6 }
  0x1b   : > { %p1921_p7 = scmp.ne.s32.totalorder %s2676_s1, %s1920_s23  ;;  %p1927_p11 = scmp.lt.u32.totalorder %s1920_s23, %s2676_s1 }
  0x1d   : > { %p1923_p9 = pnand %p2333_p8, %p1921_p7 }
  0x1f   : > { %p1924_p10 = pneg %p1923_p9 }
  0x21   : > { %p1929_p12 = pnand %p1927_p11, %p1924_p10 }
  0x23   : > { %1932 = shalt.err (!%p1929_p12)
}
  0x24   : > { %s1933_s21 = scalar_lea.vmem %s2306_s30, 1024  ;;  %p1941_p5 = scmp.lt.s32.totalorder %s2306_s30, %s2306_s30 }
  0x25   : > { %p1934_p13 = scmp.ne.s32.totalorder %s2306_s30, %s1933_s21  ;;  %p1942_p4 = scmp.lt.s32.totalorder %s1933_s21, %s1933_s21 }
  0x27   : > { %p1936_p0 = pnand %p1934_p13, %p2333_p8  ;;  %p1943_p7 = por %p1942_p4, %p1941_p5 }
  0x29   : > { %p1937_p2 = pneg %p1936_p0 }
  0x2b   : > { %p1944_p9 = pnand %p1943_p7, %p1937_p2 }
  0x2d   : > { %1947 = shalt.err (!%p1944_p9)
}
  0x2e   : > { %s2666_s22 = smov 64   ;;  %s2202_s13 = smov 4  }
  0x2f   : > { %1774 = dma.hbm_to_vmem [thread:$0]  (!%p2317_p6), %s2676_s1, 1024, %s2306_s30, [#allocation6], %s2666_s22, %s2666_s22, %s2202_s13  }
  0x30   : > { %s1948_s21 = scalar_lea.hbm %s2654_s5, 1024 }
  0x31   : > { %p1949_p4 = scmp.ne.s32.totalorder %s2654_s5, %s1948_s21  ;;  %p1955_p12 = scmp.lt.u32.totalorder %s1948_s21, %s2654_s5 }
  0x33   : > { %p1951_p10 = pnand %p1949_p4, %p2333_p8 }
  0x35   : > { %p1952_p11 = pneg %p1951_p10 }
  0x37   : > { %p1957_p13 = pnand %p1955_p12, %p1952_p11 }
  0x39   : > { %1960 = shalt.err (!%p1957_p13)
}
  0x3a   : > { %s1961_s30 = scalar_lea.vmem %s2321_s17, 1024  ;;  %p1969_p7 = scmp.lt.s32.totalorder %s2321_s17, %s2321_s17 }
  0x3b   : > { %p1962_p0 = scmp.ne.s32.totalorder %s2321_s17, %s1961_s30  ;;  %p1970_p9 = scmp.lt.s32.totalorder %s1961_s30, %s1961_s30 }
  0x3d   : > { %p1964_p2 = pnand %p1962_p0, %p2333_p8  ;;  %p1971_p4 = por %p1970_p9, %p1969_p7 }
  0x3f   : > { %p1965_p5 = pneg %p1964_p2 }
  0x41   : > { %p1972_p10 = pnand %p1971_p4, %p1965_p5 }
  0x43   : > { %1975 = shalt.err (!%p1972_p10)
}
  0x44   : > { %1780 = dma.hbm_to_vmem [thread:$0]  (!%p2317_p6), %s2654_s5, 1024, %s2321_s17, [#allocation9], %s2666_s22, %s2666_s22, %s2202_s13  }
  0x45   : > { %s1976_s23 = scalar_lea.hbm %s2658_s9, 1024 }
  0x46   : > { %p1977_p11 = scmp.ne.s32.totalorder %s2658_s9, %s1976_s23  ;;  %p1983_p0 = scmp.lt.u32.totalorder %s1976_s23, %s2658_s9 }
  0x48   : > { %p1979_p12 = pnand %p1977_p11, %p2333_p8 }
  0x4a   : > { %p1980_p13 = pneg %p1979_p12 }
  0x4c   : > { %p1985_p2 = pnand %p1983_p0, %p1980_p13 }
  0x4e   : > { %1988 = shalt.err (!%p1985_p2)
}
  0x4f   : > { %s1989_s17 = scalar_lea.vmem %s2323_s20, 1024  ;;  %p1997_p4 = scmp.lt.s32.totalorder %s2323_s20, %s2323_s20 }
  0x50   : > { %p1990_p5 = scmp.ne.s32.totalorder %s2323_s20, %s1989_s17  ;;  %p1998_p10 = scmp.lt.s32.totalorder %s1989_s17, %s1989_s17 }
  0x52   : > { %p1992_p7 = pnand %p1990_p5, %p2333_p8  ;;  %p1999_p11 = por %p1998_p10, %p1997_p4 }
  0x54   : > { %p1993_p9 = pneg %p1992_p7 }
  0x56   : > { %p2000_p12 = pnand %p1999_p11, %p1993_p9 }
  0x58   : > { %2003 = shalt.err (!%p2000_p12)
}
  0x59   : > { %1786 = dma.hbm_to_vmem [thread:$0]  (!%p2317_p6), %s2658_s9, 1024, %s2323_s20, [#allocation12], %s2666_s22, %s2666_s22, %s2202_s13  }
  0x5a   : > { %s2203_s8 = smov [#allocation7]   ;;  %s2204_s12 = smov [#allocation10]  }
  0x5b   : > { %s369_s10 = sshll.u32 %s2203_s8, 4  ;;  %s401_s23 = sshll.u32 %s2204_s12, 4  ;;  %s370_s10 = int_to_ptr.vmem [resolvable:$true] %s369_s10  ;;  %s402_s23 = int_to_ptr.vmem [resolvable:$true] %s401_s23 }
  0x5c   : > { %s2004_s19 = scalar_lea.hbm %s2652_s3, 1024 }
  0x5d   : > { %p2005_p13 = scmp.ne.s32.totalorder %s2652_s3, %s2004_s19  ;;  %p2011_p5 = scmp.lt.u32.totalorder %s2004_s19, %s2652_s3 }
  0x5f   : > { %p2007_p0 = pnand %p2005_p13, %p2333_p8 }
  0x61   : > { %p2008_p2 = pneg %p2007_p0 }
  0x63   : > { %p2013_p7 = pnand %p2011_p5, %p2008_p2 }
  0x65   : > { %2016 = shalt.err (!%p2013_p7)
}
  0x66   : > { %s2017_s20 = scalar_lea.vmem %s370_s10, 1024  ;;  %p2025_p11 = scmp.lt.s32.totalorder %s370_s10, %s370_s10 }
  0x67   : > { %p2018_p9 = scmp.ne.s32.totalorder %s370_s10, %s2017_s20  ;;  %p2026_p12 = scmp.lt.s32.totalorder %s2017_s20, %s2017_s20 }
  0x69   : > { %p2020_p4 = pnand %p2018_p9, %p2333_p8  ;;  %p2027_p1 = por %p2026_p12, %p2025_p11 }
  0x6b   : > { %p2021_p10 = pneg %p2020_p4 }
  0x6d   : > { %p2028_p3 = pnand %p2027_p1, %p2021_p10 }
  0x6f   : > { %2031 = shalt.err (!%p2028_p3)
}
  0x70   : > { %1777 = dma.hbm_to_vmem [thread:$0]  (!%p2317_p6), %s2652_s3, 1024, %s370_s10, [#allocation6], %s2666_s22, %s2666_s22, %s2202_s13  }
  0x71   : > { %s2032_s24 = scalar_lea.hbm %s2656_s7, 1024 }
  0x72   : > { %p2033_p1 = scmp.ne.s32.totalorder %s2656_s7, %s2032_s24  ;;  %p2039_p0 = scmp.lt.u32.totalorder %s2032_s24, %s2656_s7 }
  0x74   : > { %p2035_p3 = pnand %p2033_p1, %p2333_p8 }
  0x76   : > { %p2036_p13 = pneg %p2035_p3 }
  0x78   : > { %p2041_p2 = pnand %p2039_p0, %p2036_p13 }
  0x7a   : > { %2044 = shalt.err (!%p2041_p2)
}
  0x7b   : > { %s2045_s30 = scalar_lea.vmem %s402_s23, 1024  ;;  %p2053_p4 = scmp.lt.s32.totalorder %s402_s23, %s402_s23 }
  0x7c   : > { %p2046_p5 = scmp.ne.s32.totalorder %s402_s23, %s2045_s30  ;;  %p2054_p10 = scmp.lt.s32.totalorder %s2045_s30, %s2045_s30 }
  0x7e   : > { %p2048_p7 = pnand %p2046_p5, %p2333_p8  ;;  %p2055_p11 = por %p2054_p10, %p2053_p4 }
  0x80   : > { %p2049_p9 = pneg %p2048_p7 }
  0x82   : > { %p2056_p12 = pnand %p2055_p11, %p2049_p9 }
  0x84   : > { %2059 = shalt.err (!%p2056_p12)
}
  0x85   : > { %1783 = dma.hbm_to_vmem [thread:$0]  (!%p2317_p6), %s2656_s7, 1024, %s402_s23, [#allocation9], %s2666_s22, %s2666_s22, %s2202_s13  }
  0x86   : > { %s2205_s1 = smov [#allocation13]   ;;  %s2060_s24 = scalar_lea.hbm %s2660_s11, 1024 }
  0x87   : > { %s433_s6 = sshll.u32 %s2205_s1, 4  ;;  %p2061_p1 = scmp.ne.s32.totalorder %s2660_s11, %s2060_s24  ;;  %s434_s6 = int_to_ptr.vmem [resolvable:$true] %s433_s6 }
  0x88   : > { %p2067_p0 = scmp.lt.u32.totalorder %s2060_s24, %s2660_s11 }
  0x89   : > { %p2063_p3 = pnand %p2061_p1, %p2333_p8 }
  0x8b   : > { %p2064_p13 = pneg %p2063_p3 }
  0x8d   : > { %p2069_p2 = pnand %p2067_p0, %p2064_p13 }
  0x8f   : > { %2072 = shalt.err (!%p2069_p2)
}
  0x90   : > { %s2073_s23 = scalar_lea.vmem %s434_s6, 1024  ;;  %p2081_p4 = scmp.lt.s32.totalorder %s434_s6, %s434_s6 }
  0x91   : > { %p2074_p5 = scmp.ne.s32.totalorder %s434_s6, %s2073_s23  ;;  %p2082_p10 = scmp.lt.s32.totalorder %s2073_s23, %s2073_s23 }
  0x93   : > { %p2076_p7 = pnand %p2074_p5, %p2333_p8  ;;  %p2083_p11 = por %p2082_p10, %p2081_p4 }
  0x95   : > { %p2077_p9 = pneg %p2076_p7 }
  0x97   : > { %p2084_p12 = pnand %p2083_p11, %p2077_p9 }
  0x99   : > { %2087 = shalt.err (!%p2084_p12)
}
  0x9a   : > { %1789 = dma.hbm_to_vmem [thread:$0]  (!%p2317_p6), %s2660_s11, 1024, %s434_s6, [#allocation12], %s2666_s22, %s2666_s22, %s2202_s13  }
  0x9b   : > { %s1479_s18 = sadd.s32 4294967294, %s2196_s28   ;;  %s2474_s16 = sadd.s32 1, %s2196_s28  }
  0x9c   : > { %s36_s20 = ssub.s32 %s2196_s28, %s2474_s16  ;;  %s39_s1 = sadd.s32 1, %s2192_s27 }
  0x9d   : > { %p37_p8 = scmp.eq.s32.totalorder %s36_s20, 0  ;;  %p46_p1 = scmp.ne.s32.totalorder %s2192_s27, %s2188_s26 }
  0x9e   : > { %p47_p3 = scmp.eq.s32.totalorder %s2196_s28, 0  ;;  %p52_p13 = scmp.ne.s32.totalorder %s2188_s26, %s2184_s25 }
  0x9f   : > { %s2485_s8 = scalar_select %p37_p8, %s2192_s27, %s39_s1  }
  0xa0   : > { %p2487_p0 = por %p47_p3, %p46_p1  ;;  %p2679_p2 = scmp.eq.s32.totalorder %s2301_s14, 0 }
  0xa1   : > { %p328_p5 = scmp.eq.s32.totalorder %s2301_s14, 1  ;;  %p334_p7 = scmp.eq.s32.totalorder %s1479_s18, 1 }
  0xa2   : > { %p2493_p6 = por %p2679_p2, %p52_p13  ;;  %p1804_p9 = scmp.lt.s32.totalorder %s2196_s28, 2 }
  0xa3   : > { %s450_s24 = sand.u32 1, %s2192_s27   ;;  %p2500_p4 = por %p328_p5, %p46_p1 }
  0xa4   : > { %p2504_p10 = por %p334_p7, %p52_p13  ;;  %s1488_s21 = sshll.u32 %s450_s24, 4 }
  0xa5   : > { %s2681_s29 = scalar_select %p2500_p4, 1, 0 }
  0xa6   : > { %s2682_s19 = scalar_select %p2504_p10, 1, 0 }
  0xa7   : > { %s1561_s17 = sshll.u32 %s2196_s28, 8  ;;  %s454_s18 = scalar_lea.vmem [#allocation2], %s1488_s21 }
  0xa8   : > { %s2512_s10 = scalar_lea.hbm %s2649_s0, %s1561_s17  ;;  %s461_s20 = sshll.u32 %s454_s18, 4  ;;  %s2514_s20 = int_to_ptr.vmem [resolvable:$true] %s461_s20 }
  0xa9   : > { %p2518_p11 = pnand %p1804_p9, %p2487_p0  ;;  %s2522_s22 = scalar_lea.sflag [#allocation3], %s450_s24 }
  0xaa   : > { %s2088_s23 = scalar_lea.hbm %s2512_s10, 256  ;;  %s2093_s12 = scalar_lea.hbm %s2649_s0, 512 }
  0xab   : > { %p2089_p12 = scmp.ne.s32.totalorder %s2512_s10, %s2088_s23  ;;  %p2090_p8 = pneg %p2518_p11 }
  0xac   : > { %p2094_p13 = scmp.lt.u32.totalorder %s2512_s10, %s2649_s0  ;;  %p2095_p0 = scmp.lt.u32.totalorder %s2093_s12, %s2088_s23 }
  0xad   : > { %p2091_p1 = pnand %p2090_p8, %p2089_p12  ;;  %p2097_p5 = scmp.lt.u32.totalorder %s2088_s23, %s2512_s10 }
  0xae   : > { %p2096_p2 = por %p2095_p0, %p2094_p13 }
  0xaf   : > { %p2092_p3 = pneg %p2091_p1 }
  0xb0   : > { %p2098_p7 = por %p2097_p5, %p2096_p2 }
  0xb2   : > { %p2099_p9 = pnand %p2098_p7, %p2092_p3 }
  0xb4   : > { %2102 = shalt.err (!%p2099_p9)
}
  0xb5   : > { %s2103_s24 = scalar_lea.vmem %s2514_s20, 256  ;;  %s2206_s21 = smov [#allocation2]  }
  0xb6   : > { %p2104_p12 = scmp.ne.s32.totalorder %s2514_s20, %s2103_s24  ;;  %s2108_s17 = sshll.u32 %s2206_s21, 4  ;;  %s2109_s17 = int_to_ptr.vmem [resolvable:$false] %s2108_s17 }
  0xb7   : > { %s2110_s30 = scalar_lea.vmem %s2109_s17, 512  ;;  %p2111_p4 = scmp.lt.s32.totalorder %s2514_s20, %s2109_s17 }
  0xb8   : > { %p2106_p1 = pnand %p2104_p12, %p2090_p8  ;;  %p2112_p13 = scmp.lt.s32.totalorder %s2110_s30, %s2103_s24 }
  0xba   : > { %p2107_p10 = pneg %p2106_p1  ;;  %p2113_p0 = por %p2112_p13, %p2111_p4 }
  0xbc   : > { %p2114_p2 = pnand %p2113_p0, %p2107_p10 }
  0xbe   : > { %2117 = shalt.err (!%p2114_p2)
}
  0xbf   : > { %s2684_s23 = smov 64   ;;  %p2685_p8 = scmp.ne.s32.totalorder %s2674_s15, 0 }
  0xc0   : > { %1793 = dma.hbm_to_vmem [thread:$0]  (!%p2518_p11), %s2512_s10, 256, %s2514_s20, %s2522_s22, %s2684_s23, %s2684_s23, %s2202_s13  }
  0xc1   : > { %473 = sbr.rel (%p2685_p8) target bundleno = 1612 (0x64c), region = 72  ;;  %s2556_s12 = sand.u32 (!%p2685_p8), 1, %s2188_s26  }
  0xc2   : > { %s1492_s18 = sshll.u32 (!%p2685_p8), %s2556_s12, 4  ;;  %s476_s24 = scalar_lea.sflag (!%p2685_p8), [#allocation3], %s2556_s12 }
  0xc3   : > { %s2560_s21 = scalar_lea.vmem (!%p2685_p8), [#allocation2], %s1492_s18 }
  0xc8   : > { %2163 = dma.done.wait (%p2493_p6), %s476_s24, 256  }
  0xc9   : > { %2165 = vsyncadd (%p2493_p6), %s476_s24, 4294967040  ;;  %p2686_p4 = scmp.eq.s32.totalorder %s2301_s14, 0 }
  0xcb   : > { %2167 = dma.done.wait (%p2686_p4), [#allocation6], 2048   ;;  %p2687_p10 = pmov %p2686_p4 }
  0xcc   : > { %p2688_p11 = pmov %p2686_p4 }
  0xcd   : > { %2169 = vsyncadd (%p2687_p10), [#allocation6], 4294965248 }
  0xce   : > { %2171 = dma.done.wait (%p2688_p11), [#allocation9], 2048   ;;  %p2689_p3 = pmov %p2686_p4 }
  0xd0   : > { %2173 = vsyncadd (%p2689_p3), [#allocation9], 4294965248  ;;  %p2690_p5 = pmov %p2689_p3 }
  0xd1   : > { %p2691_p7 = pmov %p2689_p3 }
  0xd2   : > { %2175 = dma.done.wait (%p2690_p5), [#allocation12], 2048  }
  0xd3   : > { %2177 = vsyncadd (%p2691_p7), [#allocation12], 4294965248  ;;  %v1854_v0 = vld [vmem:[#allocation5] sm:$0xff]   ;;  %v1855_v1 = vld [vmem:[#allocation5 + $0x8] sm:$0xff]   ;;  %s2692_s1 = sld [smem:[#allocation21_spill]]  ;;  %s2693_s23 = sld [smem:[#allocation22_spill]] }
  0xd4   : > { %1623 = vmatprep.subr.bf16.mxu0 %v1854_v0  ;;  %v1856_v2 = vld [vmem:[#allocation5 + $0x10] sm:$0xff]   ;;  %v1857_v3 = vld [vmem:[#allocation5 + $0x18] sm:$0xff]   ;;  %v1864_v5 = vld [vmem:[#allocation7] sm:$0xff]   ;;  %s1499_s15 = sshll.u32 %s2556_s12, 5  ;;  %s2695_s6 = sld [smem:[#allocation24_spill]] }
  0xd5   : > { %1624 = vmatpush3.bf16.msra.mxu0 %v1854_v0  ;;  %v1862_v4 = vld [vmem:[%s2560_s21] sm:$0xff]   ;;  %v1865_v6 = vld [vmem:[#allocation7 + $0x8] sm:$0xff]   ;;  %1643 = vmatprep.subr.bf16.mxu1 %v1864_v5  ;;  %v1867_v10 = vld [vmem:[#allocation7 + $0x18] sm:$0xff]   ;;  %s545_s10 = scalar_lea.vmem [#allocation14], %s1499_s15  ;;  %p2697_p9 = scmp.ne.s32.totalorder %s2681_s29, 0 }
  0xd6   : > { %1625 = vmatprep.subr.bf16.mxu0 %v1855_v1  ;;  %1639 = vmatprep.mubr.bf16.mxu0 %v1862_v4  ;;  %v1858_v7 = vld [vmem:[#allocation5 + $0x20] sm:$0xff]   ;;  %v1866_v8 = vld [vmem:[#allocation7 + $0x10] sm:$0xff]   ;;  %v1859_v9 = vld [vmem:[#allocation5 + $0x28] sm:$0xff]   ;;  %s1349_s20 = sshll.u32 %s545_s10, 4  ;;  %s2600_s20 = int_to_ptr.vmem [resolvable:$true] %s1349_s20 }
  0xd7   : > { %1644 = vmatpush3.bf16.msra.mxu1 %v1864_v5  ;;  %v1860_v11 = vld [vmem:[#allocation5 + $0x30] sm:$0xff]   ;;  %v1868_v12 = vld [vmem:[#allocation7 + $0x20] sm:$0xff]   ;;  %v1861_v13 = vld [vmem:[#allocation5 + $0x38] sm:$0xff]   ;;  %s2118_s24 = scalar_lea.vmem %s2600_s20, 512 }
  0xd8   : > { %1645 = vmatprep.subr.bf16.mxu1 %v1865_v6  ;;  %v1869_v14 = vld [vmem:[#allocation7 + $0x28] sm:$0xff]   ;;  %v1870_v16 = vld [vmem:[#allocation7 + $0x30] sm:$0xff]   ;;  %v1871_v17 = vld [vmem:[#allocation7 + $0x38] sm:$0xff]   ;;  %p2119_p6 = scmp.ne.s32.totalorder %s2600_s20, %s2118_s24 }
  0xd9   : > { %1626 = vmatpush3.bf16.msra.mxu0 %v1855_v1  ;;  %v1863_v15 = vld [vmem:[%s2560_s21 + $0x8] sm:$0xff]   ;;  %v1872_v18 = vld [vmem:[#allocation8] sm:$0xff]   ;;  %v1874_v20 = vld [vmem:[#allocation8 + $0x10] sm:$0xff]   ;;  %s2694_s21 = sld [smem:[#allocation23_spill]] }
  0xda   : > { %1627 = vmatprep.subr.bf16.mxu0 %v1856_v2  ;;  %v1873_v19 = vld [vmem:[#allocation8 + $0x8] sm:$0xff]   ;;  %v1875_v21 = vld [vmem:[#allocation8 + $0x18] sm:$0xff]   ;;  %v1876_v22 = vld [vmem:[#allocation8 + $0x20] sm:$0xff]   ;;  %p2120_p12 = pnand %p2119_p6, %p2697_p9 }
  0xdb   : > { %1646 = vmatpush3.bf16.msra.mxu1 %v1865_v6  ;;  %v1877_v23 = vld [vmem:[#allocation8 + $0x28] sm:$0xff]   ;;  %v1500_v24 = vld [vmem:[%s2651_s2] ss:$0 sm:$0xff]  ;;  %v1878_v39 = vld [vmem:[#allocation8 + $0x30] sm:$0xff]  }
  0xdc   : > { %1647 = vmatprep.subr.bf16.mxu1 %v1866_v8  ;;  %v1879_v40 = vld [vmem:[#allocation8 + $0x38] sm:$0xff]   ;;  %v1511_v41 = vld [vmem:[%s2653_s4] ss:$0 sm:$0xff]  ;;  %v1881_v57 = vld [vmem:[#allocation10 + $0x8] sm:$0xff]   ;;  %p2121_p1 = pneg %p2120_p12 }
  0xdd   : > { %1628 = vmatpush3.bf16.msra.mxu0 %v1856_v2  ;;  %v1880_v56 = vld [vmem:[#allocation10] sm:$0xff]   ;;  %v1882_v58 = vld [vmem:[#allocation10 + $0x10] sm:$0xff]   ;;  %v1883_v59 = vld [vmem:[#allocation10 + $0x18] sm:$0xff]  }
  0xde   : > { %1629 = vmatprep.subr.bf16.mxu0 %v1857_v3  ;;  %v1884_v60 = vld [vmem:[#allocation10 + $0x20] sm:$0xff]   ;;  %v1885_v61 = vld [vmem:[#allocation10 + $0x28] sm:$0xff]   ;;  %v1886_v62 = vld [vmem:[#allocation10 + $0x30] sm:$0xff]  }
  0xdf   : > { %1648 = vmatpush3.bf16.msra.mxu1 %v1866_v8  ;;  %v1887_v63 = vld [vmem:[#allocation10 + $0x38] sm:$0xff]   ;;  %v1888_v0 = vld [vmem:[#allocation11] sm:$0xff]   ;;  %v1889_v1 = vld [vmem:[#allocation11 + $0x8] sm:$0xff]  }
  0xe0   : > { %1649 = vmatprep.subr.bf16.mxu1 %v1867_v10  ;;  %v1890_v2 = vld [vmem:[#allocation11 + $0x10] sm:$0xff]   ;;  %v1892_v4 = vld [vmem:[#allocation11 + $0x20] sm:$0xff]   ;;  %v1893_v5 = vld [vmem:[#allocation11 + $0x28] sm:$0xff]  }
  0xe1   : > { %1630 = vmatpush3.bf16.msra.mxu0 %v1857_v3  ;;  %v1891_v3 = vld [vmem:[#allocation11 + $0x18] sm:$0xff]   ;;  %v1520_v6 = vld [vmem:[%s2692_s1] ss:$0 sm:$0xff]  ;;  %s1562_s1 = sshll.u32 %s2301_s14, 9  ;;  %s1336_s14 = scalar_lea.sflag [#allocation4], %s2556_s12 }
  0xe2   : > { %1631 = vmatprep.subr.bf16.mxu0 %v1858_v7 }
  0xe3   : > { %1650 = vmatpush3.bf16.msra.mxu1 %v1867_v10 }
  0xe4   : > { %1651 = vmatprep.subr.bf16.mxu1 %v1868_v12 }
  0xe5   : > { %1632 = vmatpush3.bf16.msra.mxu0 %v1858_v7 }
  0xe6   : > { %1633 = vmatprep.subr.bf16.mxu0 %v1859_v9 }
  0xe7   : > { %1652 = vmatpush3.bf16.msra.mxu1 %v1868_v12 }
  0xe8   : > { %1653 = vmatprep.subr.bf16.mxu1 %v1869_v14 }
  0xe9   : > { %1634 = vmatpush3.bf16.msra.mxu0 %v1859_v9 }
  0xea   : > { %1635 = vmatprep.subr.bf16.mxu0 %v1860_v11 }
  0xeb   : > { %1654 = vmatpush3.bf16.msra.mxu1 %v1869_v14 }
  0xec   : > { %1655 = vmatprep.subr.bf16.mxu1 %v1870_v16 }
  0xed   : > { %1636 = vmatpush3.bf16.msra.mxu0 %v1860_v11 }
  0xee   : > { %1637 = vmatprep.subr.bf16.mxu0 %v1861_v13 }
  0xef   : > { %1656 = vmatpush3.bf16.msra.mxu1 %v1870_v16 }
  0xf0   : > { %1657 = vmatprep.subr.bf16.mxu1 %v1871_v17 }
  0xf1   : > { %1638 = vmatpush3.bf16.msra.mxu0 %v1861_v13 }
  0xf2   : > { %1663 = vmatprep.subr.bf16.mxu0 %v1872_v18 }
  0xf3   : > { %1658 = vmatpush3.bf16.msra.mxu1 %v1871_v17 }
  0xf4   : > { %1640 = vmatmul.mubr.bf16.vlgmr.msra.gmra.mrb[0].mxu0 %v1863_v15  ;;  %1683 = vmatprep.subr.bf16.mxu1 %v1880_v56 }
  0xf5   : > { %1664 = vmatpush3.bf16.msra.mxu0 %v1872_v18 }
  0xf6   : > { %1665 = vmatprep.subr.bf16.mxu0 %v1873_v19 }
  0xf9   : > { %1666 = vmatpush3.bf16.msra.mxu0 %v1873_v19 }
  0xfa   : > { %1667 = vmatprep.subr.bf16.mxu0 %v1874_v20 }
  0xfd   : > { %1668 = vmatpush3.bf16.msra.mxu0 %v1874_v20 }
  0xfe   : > { %1669 = vmatprep.subr.bf16.mxu0 %v1875_v21 }
 0x101   : > { %1670 = vmatpush3.bf16.msra.mxu0 %v1875_v21 }
 0x102   : > { %1671 = vmatprep.subr.bf16.mxu0 %v1876_v22 }
 0x105   : > { %1672 = vmatpush3.bf16.msra.mxu0 %v1876_v22 }
 0x106   : > { %1673 = vmatprep.subr.bf16.mxu0 %v1877_v23 }
 0x109   : > { %1674 = vmatpush3.bf16.msra.mxu0 %v1877_v23 }
 0x10a   : > { %1675 = vmatprep.subr.bf16.mxu0 %v1878_v39 }
 0x10d   : > { %1676 = vmatpush3.bf16.msra.mxu0 %v1878_v39  ;;  %v1896_v39 = vld [vmem:[#allocation13] sm:$0xff]  }
 0x10e   : > { %1677 = vmatprep.subr.bf16.mxu0 %v1879_v40 }
 0x111   : > { %1678 = vmatpush3.bf16.msra.mxu0 %v1879_v40  ;;  %v1897_v40 = vld [vmem:[#allocation13 + $0x8] sm:$0xff]  }
 0x112   : > { %1703 = vmatprep.subr.bf16.mxu0 %v1888_v0 }
 0x1c7   : > { %v1641_v25 = vpop.f32.mrb[0].mxu0 }
 0x1c8   : > { %v679_v26 = vadd.f32 %v1641_v25, %v1500_v24  ;;  %v670_v27 = vpop.f32.mrb[1].mxu0 }
 0x1c9   : > { %v671_v28 = vadd.f32 %v1500_v24, %v670_v27  ;;  %v1642_v29 = vpop.f32.mrb[2].mxu0 }
 0x1ca   : > { %v682_v30 = vadd.f32 %v1642_v29, %v1500_v24  ;;  %v673_v31 = vpop.f32.mrb[3].mxu0  ;;  %v687_v33 = vmax.f32 %v679_v26, 0.0 }
 0x1cb   : > { %v674_v32 = vadd.f32 %v1500_v24, %v673_v31  ;;  %v685_v35 = vmax.f32 %v671_v28, 0.0 }
 0x1cc   : > { %v688_v34 = vmax.f32 %v682_v30, 0.0 }
 0x1cd   : > { %v686_v36 = vmax.f32 %v674_v32, 0.0 }
 0x1ce   : > { %v690_v37 = vpack.c.bf16 %v688_v34, %v687_v33 }
 0x1cf   : > { %v689_v38 = vpack.c.bf16 %v686_v36, %v685_v35 }
 0x1d1   : > { %1659 = vmatprep.mubr.bf16.mxu1 %v689_v38  ;;  %v1895_v38 = vld [vmem:[#allocation11 + $0x38] sm:$0xff]  }
 0x1d2   : > { %1660 = vmatmul.mubr.bf16.vlgmr.msra.gmra.mrb[0].mxu1 %v690_v37  ;;  %v1894_v37 = vld [vmem:[#allocation11 + $0x30] sm:$0xff]  }
 0x1d3   : > { %1684 = vmatpush3.bf16.msra.mxu1 %v1880_v56 }
 0x1d4   : > { %1685 = vmatprep.subr.bf16.mxu1 %v1881_v57 }
 0x1d7   : > { %1686 = vmatpush3.bf16.msra.mxu1 %v1881_v57 }
 0x1d8   : > { %1687 = vmatprep.subr.bf16.mxu1 %v1882_v58 }
 0x1db   : > { %1688 = vmatpush3.bf16.msra.mxu1 %v1882_v58 }
 0x1dc   : > { %1689 = vmatprep.subr.bf16.mxu1 %v1883_v59 }
 0x1df   : > { %1690 = vmatpush3.bf16.msra.mxu1 %v1883_v59 }
 0x1e0   : > { %1691 = vmatprep.subr.bf16.mxu1 %v1884_v60 }
 0x1e3   : > { %1692 = vmatpush3.bf16.msra.mxu1 %v1884_v60  ;;  %v1902_v60 = vld [vmem:[#allocation13 + $0x30] sm:$0xff]  }
 0x1e4   : > { %1693 = vmatprep.subr.bf16.mxu1 %v1885_v61 }
 0x1e7   : > { %1694 = vmatpush3.bf16.msra.mxu1 %v1885_v61  ;;  %v1903_v61 = vld [vmem:[#allocation13 + $0x38] sm:$0xff]  }
 0x1e8   : > { %1695 = vmatprep.subr.bf16.mxu1 %v1886_v62 }
 0x1eb   : > { %1696 = vmatpush3.bf16.msra.mxu1 %v1886_v62  ;;  %v1538_v62 = vld [vmem:[%s2694_s21] ss:$0 sm:$0xff]  ;;  %s2207_s21 = smov [#allocation14]  }
 0x1ec   : > { %1697 = vmatprep.subr.bf16.mxu1 %v1887_v63  ;;  %s2122_s15 = sshll.u32 %s2207_s21, 4  ;;  %s2123_s15 = int_to_ptr.vmem [resolvable:$false] %s2122_s15 }
 0x1ed   : > { %s2124_s22 = scalar_lea.vmem %s2123_s15, 1024  ;;  %p2125_p13 = scmp.lt.s32.totalorder %s2600_s20, %s2123_s15 }
 0x1ee   : > { %p2126_p0 = scmp.lt.s32.totalorder %s2124_s22, %s2118_s24 }
 0x1ef   : > { %1698 = vmatpush3.bf16.msra.mxu1 %v1887_v63 }
 0x1f0   : > { %1723 = vmatprep.subr.bf16.mxu1 %v1896_v39  ;;  %p2127_p2 = por %p2126_p0, %p2125_p13 }
 0x1f2   : > { %p2128_p8 = pnand %p2127_p2, %p2121_p1 }
 0x2a5   : > { %v1661_v42 = vpop.f32.mrb[0].mxu1 }
 0x2a6   : > { %v805_v43 = vadd.f32 %v1661_v42, %v1511_v41  ;;  %v796_v44 = vpop.f32.mrb[1].mxu1  ;;  %v1899_v42 = vld [vmem:[#allocation13 + $0x18] sm:$0xff]  }
 0x2a7   : > { %v797_v45 = vadd.f32 %v1511_v41, %v796_v44  ;;  %v1662_v46 = vpop.f32.mrb[2].mxu1  ;;  %v1901_v44 = vld [vmem:[#allocation13 + $0x28] sm:$0xff]  }
 0x2a8   : > { %v808_v47 = vadd.f32 %v1662_v46, %v1511_v41  ;;  %v799_v48 = vpop.f32.mrb[3].mxu1  ;;  %v813_v50 = vmax.f32 %v805_v43, 0.0  ;;  %v1900_v43 = vld [vmem:[#allocation13 + $0x20] sm:$0xff]  }
 0x2a9   : > { %v800_v49 = vadd.f32 %v1511_v41, %v799_v48  ;;  %v811_v52 = vmax.f32 %v797_v45, 0.0  ;;  %v1898_v41 = vld [vmem:[#allocation13 + $0x10] sm:$0xff]   ;;  %v1529_v45 = vld [vmem:[%s2693_s23] ss:$0 sm:$0xff]  ;;  %s2696_s23 = sld [smem:[#allocation25_spill]] }
 0x2aa   : > { %v814_v51 = vmax.f32 %v808_v47, 0.0 }
 0x2ab   : > { %v812_v53 = vmax.f32 %v800_v49, 0.0 }
 0x2ac   : > { %v816_v54 = vpack.c.bf16 %v814_v51, %v813_v50 }
 0x2ad   : > { %v815_v55 = vpack.c.bf16 %v812_v53, %v811_v52 }
 0x2af   : > { %1679 = vmatprep.mubr.bf16.mxu0 %v815_v55  ;;  %s2605_s18 = scalar_lea.hbm %s2696_s23, %s1562_s1 }
 0x2b0   : > { %1680 = vmatmul.mubr.bf16.vlgmr.msra.gmra.mrb[4].mxu0 %v816_v54 }
 0x2b1   : > { %1704 = vmatpush3.bf16.msra.mxu0 %v1888_v0 }
 0x2b2   : > { %1705 = vmatprep.subr.bf16.mxu0 %v1889_v1 }
 0x2b5   : > { %1706 = vmatpush3.bf16.msra.mxu0 %v1889_v1 }
 0x2b6   : > { %1707 = vmatprep.subr.bf16.mxu0 %v1890_v2 }
 0x2b9   : > { %1708 = vmatpush3.bf16.msra.mxu0 %v1890_v2 }
 0x2ba   : > { %1709 = vmatprep.subr.bf16.mxu0 %v1891_v3 }
 0x2bd   : > { %1710 = vmatpush3.bf16.msra.mxu0 %v1891_v3 }
 0x2be   : > { %1711 = vmatprep.subr.bf16.mxu0 %v1892_v4 }
 0x2c1   : > { %1712 = vmatpush3.bf16.msra.mxu0 %v1892_v4 }
 0x2c2   : > { %1713 = vmatprep.subr.bf16.mxu0 %v1893_v5 }
 0x2c5   : > { %1714 = vmatpush3.bf16.msra.mxu0 %v1893_v5 }
 0x2c6   : > { %1715 = vmatprep.subr.bf16.mxu0 %v1894_v37 }
 0x2c9   : > { %1716 = vmatpush3.bf16.msra.mxu0 %v1894_v37 }
 0x2ca   : > { %1717 = vmatprep.subr.bf16.mxu0 %v1895_v38 }
 0x2cd   : > { %1718 = vmatpush3.bf16.msra.mxu0 %v1895_v38 }
 0x383   : > { %v1681_v7 = vpop.f32.mrb[4].mxu0 }
 0x384   : > { %v931_v8 = vadd.f32 %v1681_v7, %v1520_v6  ;;  %v922_v9 = vpop.f32.mrb[5].mxu0 }
 0x385   : > { %v923_v10 = vadd.f32 %v1520_v6, %v922_v9  ;;  %v1682_v11 = vpop.f32.mrb[6].mxu0 }
 0x386   : > { %v939_v12 = vsub.f32 0.0, %v931_v8  ;;  %v934_v13 = vadd.f32 %v1682_v11, %v1520_v6  ;;  %v925_v14 = vpop.f32.mrb[7].mxu0 }
 0x387   : > { %v937_v15 = vsub.f32 0.0, %v923_v10  ;;  %v926_v16 = vadd.f32 %v1520_v6, %v925_v14 }
 0x388   : > { %v945_v17 = vmul.f32 1.442695, %v939_v12  ;;  %v940_v18 = vsub.f32 0.0, %v934_v13  ;;  %v1547_v13 = vld [vmem:[%s2695_s6] ss:$0 sm:$0xff] }
 0x389   : > { %v941_v19 = vmul.f32 1.442695, %v937_v15  ;;  %v938_v20 = vsub.f32 0.0, %v926_v16 }
 0x38a   : > { %1904 = vpow2.f32 %v945_v17  ;;  %v947_v21 = vmul.f32 1.442695, %v940_v18 }
 0x38b   : > { %1906 = vpow2.f32 %v941_v19  ;;  %v943_v22 = vmul.f32 1.442695, %v938_v20 }
 0x38c   : > { %1908 = vpow2.f32 %v947_v21 }
 0x38d   : > { %1910 = vpow2.f32 %v943_v22 }
 0x394   : > { %v1905_v23 = vpop.eup %1904 }
 0x395   : > { %v1907_v24 = vpop.eup %1906  ;;  %v951_v25 = vadd.f32 1.0, %v1905_v23 }
 0x396   : > { %v1909_v26 = vpop.eup %1908  ;;  %v949_v27 = vadd.f32 1.0, %v1907_v24 }
 0x397   : > { %v1911_v28 = vpop.eup %1910  ;;  %1912 = vrcp.f32 %v951_v25  ;;  %v952_v29 = vadd.f32 1.0, %v1909_v26 }
 0x398   : > { %1914 = vrcp.f32 %v949_v27  ;;  %v950_v30 = vadd.f32 1.0, %v1911_v28 }
 0x399   : > { %1916 = vrcp.f32 %v952_v29 }
 0x39a   : > { %1918 = vrcp.f32 %v950_v30 }
 0x3a1   : > { %v1913_v31 = vpop.eup %1912 }
 0x3a2   : > { %v1915_v32 = vpop.eup %1914 }
 0x3a3   : > { %v1917_v33 = vpop.eup %1916 }
 0x3a4   : > { %v1919_v34 = vpop.eup %1918  ;;  %v958_v35 = vpack.c.bf16 %v1917_v33, %v1913_v31 }
 0x3a5   : > { %v957_v36 = vpack.c.bf16 %v1919_v34, %v1915_v32 }
 0x3a7   : > { %1699 = vmatprep.mubr.bf16.mxu1 %v957_v36 }
 0x3a8   : > { %1700 = vmatmul.mubr.bf16.vlgmr.msra.gmra.mrb[4].mxu1 %v958_v35 }
 0x3a9   : > { %1724 = vmatpush3.bf16.msra.mxu1 %v1896_v39 }
 0x3aa   : > { %1725 = vmatprep.subr.bf16.mxu1 %v1897_v40 }
 0x3ad   : > { %1726 = vmatpush3.bf16.msra.mxu1 %v1897_v40 }
 0x3ae   : > { %1727 = vmatprep.subr.bf16.mxu1 %v1898_v41 }
 0x3b1   : > { %1728 = vmatpush3.bf16.msra.mxu1 %v1898_v41 }
 0x3b2   : > { %1729 = vmatprep.subr.bf16.mxu1 %v1899_v42 }
 0x3b5   : > { %1730 = vmatpush3.bf16.msra.mxu1 %v1899_v42 }
 0x3b6   : > { %1731 = vmatprep.subr.bf16.mxu1 %v1900_v43 }
 0x3b9   : > { %1732 = vmatpush3.bf16.msra.mxu1 %v1900_v43 }
 0x3ba   : > { %1733 = vmatprep.subr.bf16.mxu1 %v1901_v44 }
 0x3bd   : > { %1734 = vmatpush3.bf16.msra.mxu1 %v1901_v44 }
 0x3be   : > { %1735 = vmatprep.subr.bf16.mxu1 %v1902_v60 }
 0x3c1   : > { %1736 = vmatpush3.bf16.msra.mxu1 %v1902_v60 }
 0x3c2   : > { %1737 = vmatprep.subr.bf16.mxu1 %v1903_v61 }
 0x3c5   : > { %1738 = vmatpush3.bf16.msra.mxu1 %v1903_v61 }
 0x47b   : > { %v1701_v46 = vpop.f32.mrb[4].mxu1 }
 0x47c   : > { %v1073_v47 = vadd.f32 %v1701_v46, %v1529_v45  ;;  %v1064_v48 = vpop.f32.mrb[5].mxu1 }
 0x47d   : > { %v1065_v49 = vadd.f32 %v1529_v45, %v1064_v48  ;;  %v1702_v50 = vpop.f32.mrb[6].mxu1 }
 0x47e   : > { %v1076_v51 = vadd.f32 %v1702_v50, %v1529_v45  ;;  %v1067_v52 = vpop.f32.mrb[7].mxu1  ;;  %v1081_v54 = vmax.f32 %v1073_v47, 0.0 }
 0x47f   : > { %v1068_v53 = vadd.f32 %v1529_v45, %v1067_v52  ;;  %v1079_v56 = vmax.f32 %v1065_v49, 0.0 }
 0x480   : > { %v1082_v55 = vmax.f32 %v1076_v51, 0.0 }
 0x481   : > { %v1080_v57 = vmax.f32 %v1068_v53, 0.0 }
 0x482   : > { %v1084_v58 = vpack.c.bf16 %v1082_v55, %v1081_v54 }
 0x483   : > { %v1083_v59 = vpack.c.bf16 %v1080_v57, %v1079_v56 }
 0x485   : > { %1719 = vmatprep.mubr.bf16.mxu0 %v1083_v59 }
 0x486   : > { %1720 = vmatmul.mubr.bf16.vlgmr.msra.gmra.mrb[8].mxu0 %v1084_v58 }
 0x559   : > { %v1721_v63 = vpop.f32.mrb[8].mxu0 }
 0x55a   : > { %v1199_v0 = vadd.f32 %v1721_v63, %v1538_v62  ;;  %v1190_v1 = vpop.f32.mrb[9].mxu0 }
 0x55b   : > { %v1191_v2 = vadd.f32 %v1538_v62, %v1190_v1  ;;  %v1722_v3 = vpop.f32.mrb[10].mxu0 }
 0x55c   : > { %v1202_v4 = vadd.f32 %v1722_v3, %v1538_v62  ;;  %v1193_v5 = vpop.f32.mrb[11].mxu0  ;;  %v1207_v7 = vmax.f32 %v1199_v0, 0.0 }
 0x55d   : > { %v1194_v6 = vadd.f32 %v1538_v62, %v1193_v5  ;;  %v1205_v9 = vmax.f32 %v1191_v2, 0.0 }
 0x55e   : > { %v1208_v8 = vmax.f32 %v1202_v4, 0.0 }
 0x55f   : > { %v1206_v10 = vmax.f32 %v1194_v6, 0.0 }
 0x560   : > { %v1210_v11 = vpack.c.bf16 %v1208_v8, %v1207_v7 }
 0x561   : > { %v1209_v12 = vpack.c.bf16 %v1206_v10, %v1205_v9 }
 0x563   : > { %1739 = vmatprep.mubr.bf16.mxu1 %v1209_v12 }
 0x564   : > { %1740 = vmatmul.mubr.bf16.vlgmr.msra.gmra.mrb[8].mxu1 %v1210_v11 }
 0x637   : > { %v1741_v14 = vpop.f32.mrb[8].mxu1 }
 0x638   : > { %v1325_v15 = vadd.f32 %v1741_v14, %v1547_v13  ;;  %v1316_v16 = vpop.f32.mrb[9].mxu1 }
 0x639   : > { %v1317_v17 = vadd.f32 %v1547_v13, %v1316_v16  ;;  %v1742_v18 = vpop.f32.mrb[10].mxu1 }
 0x63a   : > { %1333 = vst [vmem:[%s545_s10 + $0x10] sm:$0xff] %v1325_v15  ;;  %v1328_v19 = vadd.f32 %v1742_v18, %v1547_v13  ;;  %v1319_v20 = vpop.f32.mrb[11].mxu1 }
 0x63b   : > { %1331 = vst [vmem:[%s545_s10] sm:$0xff] %v1317_v17  ;;  %v1320_v21 = vadd.f32 %v1547_v13, %v1319_v20 }
 0x63c   : > { %1334 = vst [vmem:[%s545_s10 + $0x18] sm:$0xff] %v1328_v19 }
 0x63d   : > { %1332 = vst [vmem:[%s545_s10 + $0x8] sm:$0xff] %v1320_v21 }
 0x63e   : > { %2131 = shalt.err (!%p2128_p8)
}
 0x63f   : > { %s2132_s13 = scalar_lea.hbm %s2605_s18, 512  ;;  %s2136_s1 = scalar_lea.hbm %s2696_s23, 1024 }
 0x640   : > { %p2133_p4 = scmp.ne.s32.totalorder %s2605_s18, %s2132_s13  ;;  %p2137_p3 = scmp.lt.u32.totalorder %s2605_s18, %s2696_s23 }
 0x641   : > { %p2138_p5 = scmp.lt.u32.totalorder %s2136_s1, %s2132_s13  ;;  %p2140_p6 = scmp.lt.u32.totalorder %s2132_s13, %s2605_s18 }
 0x642   : > { %p2134_p10 = pnand %p2133_p4, %p2697_p9 }
 0x643   : > { %p2139_p7 = por %p2138_p5, %p2137_p3 }
 0x644   : > { %p2135_p11 = pneg %p2134_p10 }
 0x645   : > { %p2141_p12 = por %p2140_p6, %p2139_p7 }
 0x647   : > { %p2142_p1 = pnand %p2141_p12, %p2135_p11 }
 0x649   : > { %2145 = shalt.err (!%p2142_p1)
}
 0x64a   : > { %s2208_s24 = smov 128   ;;  %s2209_s21 = smov 8  }
 0x64b   : > { %1769 = dma.vmem_to_hbm [thread:$0]  (%p2697_p9), %s2600_s20, 512, %s2605_s18, %s1336_s14, %s2208_s24, %s2208_s24, %s2209_s21  }
 0x64c PF: > { %s1364_s15 = sand.u32 1, %s2184_s25   ;;  %p2698_p13 = scmp.ne.s32.totalorder %s2682_s19, 0 }
 0x64d   : > { %p2699_p0 = scmp.ge.s32.totalorder %s2196_s28, 2  ;;  %s1365_s22 = scalar_lea.sflag [#allocation4], %s1364_s15 }
 0x64f   : > { %p1795_p2 = pnand %p2699_p0, %p2698_p13 }
 0x651   : > { %2179 = dma.done.wait (!%p1795_p2), %s1365_s22, 512  }
 0x652   : > { %2181 = vsyncadd (!%p1795_p2), %s1365_s22, 4294966784  ;;  %p29_p8 = scmp.ge.s32.totalorder %s2474_s16, 4   ;;  %s2700_s25 = smov %s2188_s26 }
 0x653   : > { %s2701_s26 = smov %s2192_s27  ;;  %s2702_s27 = smov %s2485_s8 }
 0x654   : > { %s2703_s28 = smov %s2474_s16  ;;  %31 = sbr.rel (!%p29_p8) target bundleno = 15 (0xf), region = 141 }
 0x65b   :  { %1370 = vsyncpa [#allocation3], 1 }
 0x65c   :  { %1372 = vsyncpa [#allocation3 + $0x1], 1 }
 0x65d   :  { %1373 = vsyncpa [#allocation6], 1 }
 0x65e   :  { %1374 = vsyncpa [#allocation9], 1 }
 0x65f   :  { %1375 = vsyncpa [#allocation12], 1 }
 0x660   :  { %1376 = vsyncpa [#allocation4], 1 }
 0x661   :  { %1378 = vsyncpa [#allocation4 + $0x1], 1 }

// kernel: tpu_custom_call.1
= control target key start
LH: loop header
LB: loop body
LE: loop exit
PB: predicated region body
PF: predicated region fallthrough
CT: control target
= control target key end

     0   :  { %s2649_s0 = inlined_call_operand.hbm [shape: bf16[64,128], index: 0, kind: input, shape index: {}]   ;;  %s2650_s1 = inlined_call_operand.hbm [shape: bf16[128,128], index: 1, kind: input, shape index: {}]   ;;  %s2651_s2 = inlined_call_operand.vmem [shape: f32[1,128], index: 2, kind: input, shape index: {}]   ;;  %s2652_s3 = inlined_call_operand.hbm [shape: bf16[128,128], index: 3, kind: input, shape index: {}]   ;;  %s2653_s4 = inlined_call_operand.vmem [shape: f32[1,128], index: 4, kind: input, shape index: {}]   ;;  %s2654_s5 = inlined_call_operand.hbm [shape: bf16[128,128], index: 5, kind: input, shape index: {}]   ;;  %s2655_s6 = inlined_call_operand.vmem [shape: f32[1,128], index: 6, kind: input, shape index: {}]   ;;  %s2656_s7 = inlined_call_operand.hbm [shape: bf16[128,128], index: 7, kind: input, shape index: {}]   ;;  %s2657_s8 = inlined_call_operand.vmem [shape: f32[1,128], index: 8, kind: input, shape index: {}]   ;;  %s2658_s9 = inlined_call_operand.hbm [shape: bf16[128,128], index: 9, kind: input, shape index: {}]   ;;  %s2659_s10 = inlined_call_operand.vmem [shape: f32[1,128], index: 10, kind: input, shape index: {}]   ;;  %s2660_s11 = inlined_call_operand.hbm [shape: bf16[128,128], index: 11, kind: input, shape index: {}]   ;;  %s2661_s12 = inlined_call_operand.vmem [shape: f32[1,128], index: 12, kind: input, shape index: {}]   ;;  %s2662_s13 = inlined_call_operand.hbm [shape: f32[64,128], index: 13, kind: output, shape index: {}]  }
   0x1   :  { %2668 = sst [smem:[#allocation20_spill]] %s2650_s1 }
   0x2   :  { %2669 = sst [smem:[#allocation21_spill]] %s2655_s6 }
   0x3   :  { %2670 = sst [smem:[#allocation22_spill]] %s2657_s8 }
   0x4   :  { %2671 = sst [smem:[#allocation23_spill]] %s2659_s10 }
   0x5   :  { %2672 = sst [smem:[#allocation24_spill]] %s2661_s12 }
   0x6   :  { %2673 = sst [smem:[#allocation25_spill]] %s2662_s13 }
   0x7   :  { %18 = vsyncpa [#allocation3], 0 }
   0x8   :  { %20 = vsyncpa [#allocation3 + $0x1], 0 }
   0x9   :  { %21 = vsyncpa [#allocation6], 0 }
   0xa   :  { %22 = vsyncpa [#allocation9], 0 }
   0xb   :  { %23 = vsyncpa [#allocation12], 0 }
   0xc   :  { %24 = vsyncpa [#allocation4], 0 }
   0xd   :  { %26 = vsyncpa [#allocation4 + $0x1], 0  ;;  %s2280_s25 = smov 0   ;;  %s2282_s26 = smov 0  }
   0xe   :  { %s2284_s27 = smov 0   ;;  %s2286_s28 = smov 0  }
   0xf LB: > { %s2198_s29 = smov [#allocation5]   ;;  %s2301_s14 = sadd.s32 4294967295, %s2196_s28   ;;  %s2196_s28 = sphi %s2286_s28, %s2703_s28   ;;  %s2192_s27 = sphi %s2284_s27, %s2702_s27   ;;  %s2188_s26 = sphi %s2282_s26, %s2701_s26   ;;  %s2184_s25 = sphi %s2280_s25, %s2700_s25  }
  0x10   : > { %s353_s30 = sshll.u32 %s2198_s29, 4  ;;  %p1480_p0 = scmp.ge.s32.totalorder %s2196_s28, 1  ;;  %s2306_s30 = int_to_ptr.vmem [resolvable:$true] %s353_s30 }
  0x11   : > { %p2664_p1 = scmp.eq.s32.totalorder %s2301_s14, 0  ;;  %p341_p2 = scmp.lt.s32.totalorder %s2196_s28, 3 }
  0x12   : > { %s2199_s16 = smov [#allocation8]   ;;  %s2200_s19 = smov [#allocation11]  }
  0x13   : > { %p2308_p3 = pnand %p1480_p0, %p341_p2  ;;  %s385_s17 = sshll.u32 %s2199_s16, 4  ;;  %s2321_s17 = int_to_ptr.vmem [resolvable:$true] %s385_s17 }
  0x14   : > { %s417_s20 = sshll.u32 %s2200_s19, 4  ;;  %s2676_s1 = sld [smem:[#allocation20_spill]]  ;;  %s2323_s20 = int_to_ptr.vmem [resolvable:$true] %s417_s20 }
  0x15   : > { %s2674_s15 = scalar_select %p2308_p3, 1, 0 }
  0x16   : > { %p1771_p5 = pneg %p2308_p3 }
  0x18   : > { %p2317_p6 = pnand %p1771_p5, %p2664_p1 }
  0x1a   : > { %s1920_s23 = scalar_lea.hbm %s2676_s1, 1024  ;;  %p2333_p8 = pneg %p2317_p6 }
  0x1b   : > { %p1921_p7 = scmp.ne.s32.totalorder %s2676_s1, %s1920_s23  ;;  %p1927_p11 = scmp.lt.u32.totalorder %s1920_s23, %s2676_s1 }
  0x1d   : > { %p1923_p9 = pnand %p2333_p8, %p1921_p7 }
  0x1f   : > { %p1924_p10 = pneg %p1923_p9 }
  0x21   : > { %p1929_p12 = pnand %p1927_p11, %p1924_p10 }
  0x23   : > { %1932 = shalt.err (!%p1929_p12)
}
  0x24   : > { %s1933_s21 = scalar_lea.vmem %s2306_s30, 1024  ;;  %p1941_p5 = scmp.lt.s32.totalorder %s2306_s30, %s2306_s30 }
  0x25   : > { %p1934_p13 = scmp.ne.s32.totalorder %s2306_s30, %s1933_s21  ;;  %p1942_p4 = scmp.lt.s32.totalorder %s1933_s21, %s1933_s21 }
  0x27   : > { %p1936_p0 = pnand %p1934_p13, %p2333_p8  ;;  %p1943_p7 = por %p1942_p4, %p1941_p5 }
  0x29   : > { %p1937_p2 = pneg %p1936_p0 }
  0x2b   : > { %p1944_p9 = pnand %p1943_p7, %p1937_p2 }
  0x2d   : > { %1947 = shalt.err (!%p1944_p9)
}
  0x2e   : > { %s2666_s22 = smov 64   ;;  %s2202_s13 = smov 4  }
  0x2f   : > { %1774 = dma.hbm_to_vmem [thread:$0]  (!%p2317_p6), %s2676_s1, 1024, %s2306_s30, [#allocation6], %s2666_s22, %s2666_s22, %s2202_s13  }
  0x30   : > { %s1948_s21 = scalar_lea.hbm %s2654_s5, 1024 }
  0x31   : > { %p1949_p4 = scmp.ne.s32.totalorder %s2654_s5, %s1948_s21  ;;  %p1955_p12 = scmp.lt.u32.totalorder %s1948_s21, %s2654_s5 }
  0x33   : > { %p1951_p10 = pnand %p1949_p4, %p2333_p8 }
  0x35   : > { %p1952_p11 = pneg %p1951_p10 }
  0x37   : > { %p1957_p13 = pnand %p1955_p12, %p1952_p11 }
  0x39   : > { %1960 = shalt.err (!%p1957_p13)
}
  0x3a   : > { %s1961_s30 = scalar_lea.vmem %s2321_s17, 1024  ;;  %p1969_p7 = scmp.lt.s32.totalorder %s2321_s17, %s2321_s17 }
  0x3b   : > { %p1962_p0 = scmp.ne.s32.totalorder %s2321_s17, %s1961_s30  ;;  %p1970_p9 = scmp.lt.s32.totalorder %s1961_s30, %s1961_s30 }
  0x3d   : > { %p1964_p2 = pnand %p1962_p0, %p2333_p8  ;;  %p1971_p4 = por %p1970_p9, %p1969_p7 }
  0x3f   : > { %p1965_p5 = pneg %p1964_p2 }
  0x41   : > { %p1972_p10 = pnand %p1971_p4, %p1965_p5 }
  0x43   : > { %1975 = shalt.err (!%p1972_p10)
}
  0x44   : > { %1780 = dma.hbm_to_vmem [thread:$0]  (!%p2317_p6), %s2654_s5, 1024, %s2321_s17, [#allocation9], %s2666_s22, %s2666_s22, %s2202_s13  }
  0x45   : > { %s1976_s23 = scalar_lea.hbm %s2658_s9, 1024 }
  0x46   : > { %p1977_p11 = scmp.ne.s32.totalorder %s2658_s9, %s1976_s23  ;;  %p1983_p0 = scmp.lt.u32.totalorder %s1976_s23, %s2658_s9 }
  0x48   : > { %p1979_p12 = pnand %p1977_p11, %p2333_p8 }
  0x4a   : > { %p1980_p13 = pneg %p1979_p12 }
  0x4c   : > { %p1985_p2 = pnand %p1983_p0, %p1980_p13 }
  0x4e   : > { %1988 = shalt.err (!%p1985_p2)
}
  0x4f   : > { %s1989_s17 = scalar_lea.vmem %s2323_s20, 1024  ;;  %p1997_p4 = scmp.lt.s32.totalorder %s2323_s20, %s2323_s20 }
  0x50   : > { %p1990_p5 = scmp.ne.s32.totalorder %s2323_s20, %s1989_s17  ;;  %p1998_p10 = scmp.lt.s32.totalorder %s1989_s17, %s1989_s17 }
  0x52   : > { %p1992_p7 = pnand %p1990_p5, %p2333_p8  ;;  %p1999_p11 = por %p1998_p10, %p1997_p4 }
  0x54   : > { %p1993_p9 = pneg %p1992_p7 }
  0x56   : > { %p2000_p12 = pnand %p1999_p11, %p1993_p9 }
  0x58   : > { %2003 = shalt.err (!%p2000_p12)
}
  0x59   : > { %1786 = dma.hbm_to_vmem [thread:$0]  (!%p2317_p6), %s2658_s9, 1024, %s2323_s20, [#allocation12], %s2666_s22, %s2666_s22, %s2202_s13  }
  0x5a   : > { %s2203_s8 = smov [#allocation7]   ;;  %s2204_s12 = smov [#allocation10]  }
  0x5b   : > { %s369_s10 = sshll.u32 %s2203_s8, 4  ;;  %s401_s23 = sshll.u32 %s2204_s12, 4  ;;  %s370_s10 = int_to_ptr.vmem [resolvable:$true] %s369_s10  ;;  %s402_s23 = int_to_ptr.vmem [resolvable:$true] %s401_s23 }
  0x5c   : > { %s2004_s19 = scalar_lea.hbm %s2652_s3, 1024 }
  0x5d   : > { %p2005_p13 = scmp.ne.s32.totalorder %s2652_s3, %s2004_s19  ;;  %p2011_p5 = scmp.lt.u32.totalorder %s2004_s19, %s2652_s3 }
  0x5f   : > { %p2007_p0 = pnand %p2005_p13, %p2333_p8 }
  0x61   : > { %p2008_p2 = pneg %p2007_p0 }
  0x63   : > { %p2013_p7 = pnand %p2011_p5, %p2008_p2 }
  0x65   : > { %2016 = shalt.err (!%p2013_p7)
}
  0x66   : > { %s2017_s20 = scalar_lea.vmem %s370_s10, 1024  ;;  %p2025_p11 = scmp.lt.s32.totalorder %s370_s10, %s370_s10 }
  0x67   : > { %p2018_p9 = scmp.ne.s32.totalorder %s370_s10, %s2017_s20  ;;  %p2026_p12 = scmp.lt.s32.totalorder %s2017_s20, %s2017_s20 }
  0x69   : > { %p2020_p4 = pnand %p2018_p9, %p2333_p8  ;;  %p2027_p1 = por %p2026_p12, %p2025_p11 }
  0x6b   : > { %p2021_p10 = pneg %p2020_p4 }
  0x6d   : > { %p2028_p3 = pnand %p2027_p1, %p2021_p10 }
  0x6f   : > { %2031 = shalt.err (!%p2028_p3)
}
  0x70   : > { %1777 = dma.hbm_to_vmem [thread:$0]  (!%p2317_p6), %s2652_s3, 1024, %s370_s10, [#allocation6], %s2666_s22, %s2666_s22, %s2202_s13  }
  0x71   : > { %s2032_s24 = scalar_lea.hbm %s2656_s7, 1024 }
  0x72   : > { %p2033_p1 = scmp.ne.s32.totalorder %s2656_s7, %s2032_s24  ;;  %p2039_p0 = scmp.lt.u32.totalorder %s2032_s24, %s2656_s7 }
  0x74   : > { %p2035_p3 = pnand %p2033_p1, %p2333_p8 }
  0x76   : > { %p2036_p13 = pneg %p2035_p3 }
  0x78   : > { %p2041_p2 = pnand %p2039_p0, %p2036_p13 }
  0x7a   : > { %2044 = shalt.err (!%p2041_p2)
}
  0x7b   : > { %s2045_s30 = scalar_lea.vmem %s402_s23, 1024  ;;  %p2053_p4 = scmp.lt.s32.totalorder %s402_s23, %s402_s23 }
  0x7c   : > { %p2046_p5 = scmp.ne.s32.totalorder %s402_s23, %s2045_s30  ;;  %p2054_p10 = scmp.lt.s32.totalorder %s2045_s30, %s2045_s30 }
  0x7e   : > { %p2048_p7 = pnand %p2046_p5, %p2333_p8  ;;  %p2055_p11 = por %p2054_p10, %p2053_p4 }
  0x80   : > { %p2049_p9 = pneg %p2048_p7 }
  0x82   : > { %p2056_p12 = pnand %p2055_p11, %p2049_p9 }
  0x84   : > { %2059 = shalt.err (!%p2056_p12)
}
  0x85   : > { %1783 = dma.hbm_to_vmem [thread:$0]  (!%p2317_p6), %s2656_s7, 1024, %s402_s23, [#allocation9], %s2666_s22, %s2666_s22, %s2202_s13  }
  0x86   : > { %s2205_s1 = smov [#allocation13]   ;;  %s2060_s24 = scalar_lea.hbm %s2660_s11, 1024 }
  0x87   : > { %s433_s6 = sshll.u32 %s2205_s1, 4  ;;  %p2061_p1 = scmp.ne.s32.totalorder %s2660_s11, %s2060_s24  ;;  %s434_s6 = int_to_ptr.vmem [resolvable:$true] %s433_s6 }
  0x88   : > { %p2067_p0 = scmp.lt.u32.totalorder %s2060_s24, %s2660_s11 }
  0x89   : > { %p2063_p3 = pnand %p2061_p1, %p2333_p8 }
  0x8b   : > { %p2064_p13 = pneg %p2063_p3 }
  0x8d   : > { %p2069_p2 = pnand %p2067_p0, %p2064_p13 }
  0x8f   : > { %2072 = shalt.err (!%p2069_p2)
}
  0x90   : > { %s2073_s23 = scalar_lea.vmem %s434_s6, 1024  ;;  %p2081_p4 = scmp.lt.s32.totalorder %s434_s6, %s434_s6 }
  0x91   : > { %p2074_p5 = scmp.ne.s32.totalorder %s434_s6, %s2073_s23  ;;  %p2082_p10 = scmp.lt.s32.totalorder %s2073_s23, %s2073_s23 }
  0x93   : > { %p2076_p7 = pnand %p2074_p5, %p2333_p8  ;;  %p2083_p11 = por %p2082_p10, %p2081_p4 }
  0x95   : > { %p2077_p9 = pneg %p2076_p7 }
  0x97   : > { %p2084_p12 = pnand %p2083_p11, %p2077_p9 }
  0x99   : > { %2087 = shalt.err (!%p2084_p12)
}
  0x9a   : > { %1789 = dma.hbm_to_vmem [thread:$0]  (!%p2317_p6), %s2660_s11, 1024, %s434_s6, [#allocation12], %s2666_s22, %s2666_s22, %s2202_s13  }
  0x9b   : > { %s1479_s18 = sadd.s32 4294967294, %s2196_s28   ;;  %s2474_s16 = sadd.s32 1, %s2196_s28  }
  0x9c   : > { %s36_s20 = ssub.s32 %s2196_s28, %s2474_s16  ;;  %s39_s1 = sadd.s32 1, %s2192_s27 }
  0x9d   : > { %p37_p8 = scmp.eq.s32.totalorder %s36_s20, 0  ;;  %p46_p1 = scmp.ne.s32.totalorder %s2192_s27, %s2188_s26 }
  0x9e   : > { %p47_p3 = scmp.eq.s32.totalorder %s2196_s28, 0  ;;  %p52_p13 = scmp.ne.s32.totalorder %s2188_s26, %s2184_s25 }
  0x9f   : > { %s2485_s8 = scalar_select %p37_p8, %s2192_s27, %s39_s1  }
  0xa0   : > { %p2487_p0 = por %p47_p3, %p46_p1  ;;  %p2679_p2 = scmp.eq.s32.totalorder %s2301_s14, 0 }
  0xa1   : > { %p328_p5 = scmp.eq.s32.totalorder %s2301_s14, 1  ;;  %p334_p7 = scmp.eq.s32.totalorder %s1479_s18, 1 }
  0xa2   : > { %p2493_p6 = por %p2679_p2, %p52_p13  ;;  %p1804_p9 = scmp.lt.s32.totalorder %s2196_s28, 2 }
  0xa3   : > { %s450_s24 = sand.u32 1, %s2192_s27   ;;  %p2500_p4 = por %p328_p5, %p46_p1 }
  0xa4   : > { %p2504_p10 = por %p334_p7, %p52_p13  ;;  %s1488_s21 = sshll.u32 %s450_s24, 4 }
  0xa5   : > { %s2681_s29 = scalar_select %p2500_p4, 1, 0 }
  0xa6   : > { %s2682_s19 = scalar_select %p2504_p10, 1, 0 }
  0xa7   : > { %s1561_s17 = sshll.u32 %s2196_s28, 8  ;;  %s454_s18 = scalar_lea.vmem [#allocation2], %s1488_s21 }
  0xa8   : > { %s2512_s10 = scalar_lea.hbm %s2649_s0, %s1561_s17  ;;  %s461_s20 = sshll.u32 %s454_s18, 4  ;;  %s2514_s20 = int_to_ptr.vmem [resolvable:$true] %s461_s20 }
  0xa9   : > { %p2518_p11 = pnand %p1804_p9, %p2487_p0  ;;  %s2522_s22 = scalar_lea.sflag [#allocation3], %s450_s24 }
  0xaa   : > { %s2088_s23 = scalar_lea.hbm %s2512_s10, 256  ;;  %s2093_s12 = scalar_lea.hbm %s2649_s0, 512 }
  0xab   : > { %p2089_p12 = scmp.ne.s32.totalorder %s2512_s10, %s2088_s23  ;;  %p2090_p8 = pneg %p2518_p11 }
  0xac   : > { %p2094_p13 = scmp.lt.u32.totalorder %s2512_s10, %s2649_s0  ;;  %p2095_p0 = scmp.lt.u32.totalorder %s2093_s12, %s2088_s23 }
  0xad   : > { %p2091_p1 = pnand %p2090_p8, %p2089_p12  ;;  %p2097_p5 = scmp.lt.u32.totalorder %s2088_s23, %s2512_s10 }
  0xae   : > { %p2096_p2 = por %p2095_p0, %p2094_p13 }
  0xaf   : > { %p2092_p3 = pneg %p2091_p1 }
  0xb0   : > { %p2098_p7 = por %p2097_p5, %p2096_p2 }
  0xb2   : > { %p2099_p9 = pnand %p2098_p7, %p2092_p3 }
  0xb4   : > { %2102 = shalt.err (!%p2099_p9)
}
  0xb5   : > { %s2103_s24 = scalar_lea.vmem %s2514_s20, 256  ;;  %s2206_s21 = smov [#allocation2]  }
  0xb6   : > { %p2104_p12 = scmp.ne.s32.totalorder %s2514_s20, %s2103_s24  ;;  %s2108_s17 = sshll.u32 %s2206_s21, 4  ;;  %s2109_s17 = int_to_ptr.vmem [resolvable:$false] %s2108_s17 }
  0xb7   : > { %s2110_s30 = scalar_lea.vmem %s2109_s17, 512  ;;  %p2111_p4 = scmp.lt.s32.totalorder %s2514_s20, %s2109_s17 }
  0xb8   : > { %p2106_p1 = pnand %p2104_p12, %p2090_p8  ;;  %p2112_p13 = scmp.lt.s32.totalorder %s2110_s30, %s2103_s24 }
  0xba   : > { %p2107_p10 = pneg %p2106_p1  ;;  %p2113_p0 = por %p2112_p13, %p2111_p4 }
  0xbc   : > { %p2114_p2 = pnand %p2113_p0, %p2107_p10 }
  0xbe   : > { %2117 = shalt.err (!%p2114_p2)
}
  0xbf   : > { %s2684_s23 = smov 64   ;;  %p2685_p8 = scmp.ne.s32.totalorder %s2674_s15, 0 }
  0xc0   : > { %1793 = dma.hbm_to_vmem [thread:$0]  (!%p2518_p11), %s2512_s10, 256, %s2514_s20, %s2522_s22, %s2684_s23, %s2684_s23, %s2202_s13  }
  0xc1   : > { %473 = sbr.rel (%p2685_p8) target bundleno = 1612 (0x64c), region = 72  ;;  %s2556_s12 = sand.u32 (!%p2685_p8), 1, %s2188_s26  }
  0xc2   : > { %s1492_s18 = sshll.u32 (!%p2685_p8), %s2556_s12, 4  ;;  %s476_s24 = scalar_lea.sflag (!%p2685_p8), [#allocation3], %s2556_s12 }
  0xc3   : > { %s2560_s21 = scalar_lea.vmem (!%p2685_p8), [#allocation2], %s1492_s18 }
  0xc8   : > { %2163 = dma.done.wait (%p2493_p6), %s476_s24, 256  }
  0xc9   : > { %2165 = vsyncadd (%p2493_p6), %s476_s24, 4294967040  ;;  %p2686_p4 = scmp.eq.s32.totalorder %s2301_s14, 0 }
  0xcb   : > { %2167 = dma.done.wait (%p2686_p4), [#allocation6], 2048   ;;  %p2687_p10 = pmov %p2686_p4 }
  0xcc   : > { %p2688_p11 = pmov %p2686_p4 }
  0xcd   : > { %2169 = vsyncadd (%p2687_p10), [#allocation6], 4294965248 }
  0xce   : > { %2171 = dma.done.wait (%p2688_p11), [#allocation9], 2048   ;;  %p2689_p3 = pmov %p2686_p4 }
  0xd0   : > { %2173 = vsyncadd (%p2689_p3), [#allocation9], 4294965248  ;;  %p2690_p5 = pmov %p2689_p3 }
  0xd1   : > { %p2691_p7 = pmov %p2689_p3 }
  0xd2   : > { %2175 = dma.done.wait (%p2690_p5), [#allocation12], 2048  }
  0xd3   : > { %2177 = vsyncadd (%p2691_p7), [#allocation12], 4294965248  ;;  %v1854_v0 = vld [vmem:[#allocation5] sm:$0xff]   ;;  %v1855_v1 = vld [vmem:[#allocation5 + $0x8] sm:$0xff]   ;;  %s2692_s1 = sld [smem:[#allocation21_spill]]  ;;  %s2693_s23 = sld [smem:[#allocation22_spill]] }
  0xd4   : > { %1623 = vmatprep.subr.bf16.mxu0 %v1854_v0  ;;  %v1856_v2 = vld [vmem:[#allocation5 + $0x10] sm:$0xff]   ;;  %v1857_v3 = vld [vmem:[#allocation5 + $0x18] sm:$0xff]   ;;  %v1864_v5 = vld [vmem:[#allocation7] sm:$0xff]   ;;  %s1499_s15 = sshll.u32 %s2556_s12, 5  ;;  %s2695_s6 = sld [smem:[#allocation24_spill]] }
  0xd5   : > { %1624 = vmatpush3.bf16.msra.mxu0 %v1854_v0  ;;  %v1862_v4 = vld [vmem:[%s2560_s21] sm:$0xff]   ;;  %v1865_v6 = vld [vmem:[#allocation7 + $0x8] sm:$0xff]   ;;  %1643 = vmatprep.subr.bf16.mxu1 %v1864_v5  ;;  %v1867_v10 = vld [vmem:[#allocation7 + $0x18] sm:$0xff]   ;;  %s545_s10 = scalar_lea.vmem [#allocation14], %s1499_s15  ;;  %p2697_p9 = scmp.ne.s32.totalorder %s2681_s29, 0 }
  0xd6   : > { %1625 = vmatprep.subr.bf16.mxu0 %v1855_v1  ;;  %1639 = vmatprep.mubr.bf16.mxu0 %v1862_v4  ;;  %v1858_v7 = vld [vmem:[#allocation5 + $0x20] sm:$0xff]   ;;  %v1866_v8 = vld [vmem:[#allocation7 + $0x10] sm:$0xff]   ;;  %v1859_v9 = vld [vmem:[#allocation5 + $0x28] sm:$0xff]   ;;  %s1349_s20 = sshll.u32 %s545_s10, 4  ;;  %s2600_s20 = int_to_ptr.vmem [resolvable:$true] %s1349_s20 }
  0xd7   : > { %1644 = vmatpush3.bf16.msra.mxu1 %v1864_v5  ;;  %v1860_v11 = vld [vmem:[#allocation5 + $0x30] sm:$0xff]   ;;  %v1868_v12 = vld [vmem:[#allocation7 + $0x20] sm:$0xff]   ;;  %v1861_v13 = vld [vmem:[#allocation5 + $0x38] sm:$0xff]   ;;  %s2118_s24 = scalar_lea.vmem %s2600_s20, 512 }
  0xd8   : > { %1645 = vmatprep.subr.bf16.mxu1 %v1865_v6  ;;  %v1869_v14 = vld [vmem:[#allocation7 + $0x28] sm:$0xff]   ;;  %v1870_v16 = vld [vmem:[#allocation7 + $0x30] sm:$0xff]   ;;  %v1871_v17 = vld [vmem:[#allocation7 + $0x38] sm:$0xff]   ;;  %p2119_p6 = scmp.ne.s32.totalorder %s2600_s20, %s2118_s24 }
  0xd9   : > { %1626 = vmatpush3.bf16.msra.mxu0 %v1855_v1  ;;  %v1863_v15 = vld [vmem:[%s2560_s21 + $0x8] sm:$0xff]   ;;  %v1872_v18 = vld [vmem:[#allocation8] sm:$0xff]   ;;  %v1874_v20 = vld [vmem:[#allocation8 + $0x10] sm:$0xff]   ;;  %s2694_s21 = sld [smem:[#allocation23_spill]] }
  0xda   : > { %1627 = vmatprep.subr.bf16.mxu0 %v1856_v2  ;;  %v1873_v19 = vld [vmem:[#allocation8 + $0x8] sm:$0xff]   ;;  %v1875_v21 = vld [vmem:[#allocation8 + $0x18] sm:$0xff]   ;;  %v1876_v22 = vld [vmem:[#allocation8 + $0x20] sm:$0xff]   ;;  %p2120_p12 = pnand %p2119_p6, %p2697_p9 }
  0xdb   : > { %1646 = vmatpush3.bf16.msra.mxu1 %v1865_v6  ;;  %v1877_v23 = vld [vmem:[#allocation8 + $0x28] sm:$0xff]   ;;  %v1500_v24 = vld [vmem:[%s2651_s2] ss:$0 sm:$0xff]  ;;  %v1878_v39 = vld [vmem:[#allocation8 + $0x30] sm:$0xff]  }
  0xdc   : > { %1647 = vmatprep.subr.bf16.mxu1 %v1866_v8  ;;  %v1879_v40 = vld [vmem:[#allocation8 + $0x38] sm:$0xff]   ;;  %v1511_v41 = vld [vmem:[%s2653_s4] ss:$0 sm:$0xff]  ;;  %v1881_v57 = vld [vmem:[#allocation10 + $0x8] sm:$0xff]   ;;  %p2121_p1 = pneg %p2120_p12 }
  0xdd   : > { %1628 = vmatpush3.bf16.msra.mxu0 %v1856_v2  ;;  %v1880_v56 = vld [vmem:[#allocation10] sm:$0xff]   ;;  %v1882_v58 = vld [vmem:[#allocation10 + $0x10] sm:$0xff]   ;;  %v1883_v59 = vld [vmem:[#allocation10 + $0x18] sm:$0xff]  }
  0xde   : > { %1629 = vmatprep.subr.bf16.mxu0 %v1857_v3  ;;  %v1884_v60 = vld [vmem:[#allocation10 + $0x20] sm:$0xff]   ;;  %v1885_v61 = vld [vmem:[#allocation10 + $0x28] sm:$0xff]   ;;  %v1886_v62 = vld [vmem:[#allocation10 + $0x30] sm:$0xff]  }
  0xdf   : > { %1648 = vmatpush3.bf16.msra.mxu1 %v1866_v8  ;;  %v1887_v63 = vld [vmem:[#allocation10 + $0x38] sm:$0xff]   ;;  %v1888_v0 = vld [vmem:[#allocation11] sm:$0xff]   ;;  %v1889_v1 = vld [vmem:[#allocation11 + $0x8] sm:$0xff]  }
  0xe0   : > { %1649 = vmatprep.subr.bf16.mxu1 %v1867_v10  ;;  %v1890_v2 = vld [vmem:[#allocation11 + $0x10] sm:$0xff]   ;;  %v1892_v4 = vld [vmem:[#allocation11 + $0x20] sm:$0xff]   ;;  %v1893_v5 = vld [vmem:[#allocation11 + $0x28] sm:$0xff]  }
  0xe1   : > { %1630 = vmatpush3.bf16.msra.mxu0 %v1857_v3  ;;  %v1891_v3 = vld [vmem:[#allocation11 + $0x18] sm:$0xff]   ;;  %v1520_v6 = vld [vmem:[%s2692_s1] ss:$0 sm:$0xff]  ;;  %s1562_s1 = sshll.u32 %s2301_s14, 9  ;;  %s1336_s14 = scalar_lea.sflag [#allocation4], %s2556_s12 }
  0xe2   : > { %1631 = vmatprep.subr.bf16.mxu0 %v1858_v7 }
  0xe3   : > { %1650 = vmatpush3.bf16.msra.mxu1 %v1867_v10 }
  0xe4   : > { %1651 = vmatprep.subr.bf16.mxu1 %v1868_v12 }
  0xe5   : > { %1632 = vmatpush3.bf16.msra.mxu0 %v1858_v7 }
  0xe6   : > { %1633 = vmatprep.subr.bf16.mxu0 %v1859_v9 }
  0xe7   : > { %1652 = vmatpush3.bf16.msra.mxu1 %v1868_v12 }
  0xe8   : > { %1653 = vmatprep.subr.bf16.mxu1 %v1869_v14 }
  0xe9   : > { %1634 = vmatpush3.bf16.msra.mxu0 %v1859_v9 }
  0xea   : > { %1635 = vmatprep.subr.bf16.mxu0 %v1860_v11 }
  0xeb   : > { %1654 = vmatpush3.bf16.msra.mxu1 %v1869_v14 }
  0xec   : > { %1655 = vmatprep.subr.bf16.mxu1 %v1870_v16 }
  0xed   : > { %1636 = vmatpush3.bf16.msra.mxu0 %v1860_v11 }
  0xee   : > { %1637 = vmatprep.subr.bf16.mxu0 %v1861_v13 }
  0xef   : > { %1656 = vmatpush3.bf16.msra.mxu1 %v1870_v16 }
  0xf0   : > { %1657 = vmatprep.subr.bf16.mxu1 %v1871_v17 }
  0xf1   : > { %1638 = vmatpush3.bf16.msra.mxu0 %v1861_v13 }
  0xf2   : > { %1663 = vmatprep.subr.bf16.mxu0 %v1872_v18 }
  0xf3   : > { %1658 = vmatpush3.bf16.msra.mxu1 %v1871_v17 }
  0xf4   : > { %1640 = vmatmul.mubr.bf16.vlgmr.msra.gmra.mrb[0].mxu0 %v1863_v15  ;;  %1683 = vmatprep.subr.bf16.mxu1 %v1880_v56 }
  0xf5   : > { %1664 = vmatpush3.bf16.msra.mxu0 %v1872_v18 }
  0xf6   : > { %1665 = vmatprep.subr.bf16.mxu0 %v1873_v19 }
  0xf9   : > { %1666 = vmatpush3.bf16.msra.mxu0 %v1873_v19 }
  0xfa   : > { %1667 = vmatprep.subr.bf16.mxu0 %v1874_v20 }
  0xfd   : > { %1668 = vmatpush3.bf16.msra.mxu0 %v1874_v20 }
  0xfe   : > { %1669 = vmatprep.subr.bf16.mxu0 %v1875_v21 }
 0x101   : > { %1670 = vmatpush3.bf16.msra.mxu0 %v1875_v21 }
 0x102   : > { %1671 = vmatprep.subr.bf16.mxu0 %v1876_v22 }
 0x105   : > { %1672 = vmatpush3.bf16.msra.mxu0 %v1876_v22 }
 0x106   : > { %1673 = vmatprep.subr.bf16.mxu0 %v1877_v23 }
 0x109   : > { %1674 = vmatpush3.bf16.msra.mxu0 %v1877_v23 }
 0x10a   : > { %1675 = vmatprep.subr.bf16.mxu0 %v1878_v39 }
 0x10d   : > { %1676 = vmatpush3.bf16.msra.mxu0 %v1878_v39  ;;  %v1896_v39 = vld [vmem:[#allocation13] sm:$0xff]  }
 0x10e   : > { %1677 = vmatprep.subr.bf16.mxu0 %v1879_v40 }
 0x111   : > { %1678 = vmatpush3.bf16.msra.mxu0 %v1879_v40  ;;  %v1897_v40 = vld [vmem:[#allocation13 + $0x8] sm:$0xff]  }
 0x112   : > { %1703 = vmatprep.subr.bf16.mxu0 %v1888_v0 }
 0x1c7   : > { %v1641_v25 = vpop.f32.mrb[0].mxu0 }
 0x1c8   : > { %v679_v26 = vadd.f32 %v1641_v25, %v1500_v24  ;;  %v670_v27 = vpop.f32.mrb[1].mxu0 }
 0x1c9   : > { %v671_v28 = vadd.f32 %v1500_v24, %v670_v27  ;;  %v1642_v29 = vpop.f32.mrb[2].mxu0 }
 0x1ca   : > { %v682_v30 = vadd.f32 %v1642_v29, %v1500_v24  ;;  %v673_v31 = vpop.f32.mrb[3].mxu0  ;;  %v687_v33 = vmax.f32 %v679_v26, 0.0 }
 0x1cb   : > { %v674_v32 = vadd.f32 %v1500_v24, %v673_v31  ;;  %v685_v35 = vmax.f32 %v671_v28, 0.0 }
 0x1cc   : > { %v688_v34 = vmax.f32 %v682_v30, 0.0 }
 0x1cd   : > { %v686_v36 = vmax.f32 %v674_v32, 0.0 }
 0x1ce   : > { %v690_v37 = vpack.c.bf16 %v688_v34, %v687_v33 }
 0x1cf   : > { %v689_v38 = vpack.c.bf16 %v686_v36, %v685_v35 }
 0x1d1   : > { %1659 = vmatprep.mubr.bf16.mxu1 %v689_v38  ;;  %v1895_v38 = vld [vmem:[#allocation11 + $0x38] sm:$0xff]  }
 0x1d2   : > { %1660 = vmatmul.mubr.bf16.vlgmr.msra.gmra.mrb[0].mxu1 %v690_v37  ;;  %v1894_v37 = vld [vmem:[#allocation11 + $0x30] sm:$0xff]  }
 0x1d3   : > { %1684 = vmatpush3.bf16.msra.mxu1 %v1880_v56 }
 0x1d4   : > { %1685 = vmatprep.subr.bf16.mxu1 %v1881_v57 }
 0x1d7   : > { %1686 = vmatpush3.bf16.msra.mxu1 %v1881_v57 }
 0x1d8   : > { %1687 = vmatprep.subr.bf16.mxu1 %v1882_v58 }
 0x1db   : > { %1688 = vmatpush3.bf16.msra.mxu1 %v1882_v58 }
 0x1dc   : > { %1689 = vmatprep.subr.bf16.mxu1 %v1883_v59 }
 0x1df   : > { %1690 = vmatpush3.bf16.msra.mxu1 %v1883_v59 }
 0x1e0   : > { %1691 = vmatprep.subr.bf16.mxu1 %v1884_v60 }
 0x1e3   : > { %1692 = vmatpush3.bf16.msra.mxu1 %v1884_v60  ;;  %v1902_v60 = vld [vmem:[#allocation13 + $0x30] sm:$0xff]  }
 0x1e4   : > { %1693 = vmatprep.subr.bf16.mxu1 %v1885_v61 }
 0x1e7   : > { %1694 = vmatpush3.bf16.msra.mxu1 %v1885_v61  ;;  %v1903_v61 = vld [vmem:[#allocation13 + $0x38] sm:$0xff]  }
 0x1e8   : > { %1695 = vmatprep.subr.bf16.mxu1 %v1886_v62 }
 0x1eb   : > { %1696 = vmatpush3.bf16.msra.mxu1 %v1886_v62  ;;  %v1538_v62 = vld [vmem:[%s2694_s21] ss:$0 sm:$0xff]  ;;  %s2207_s21 = smov [#allocation14]  }
 0x1ec   : > { %1697 = vmatprep.subr.bf16.mxu1 %v1887_v63  ;;  %s2122_s15 = sshll.u32 %s2207_s21, 4  ;;  %s2123_s15 = int_to_ptr.vmem [resolvable:$false] %s2122_s15 }
 0x1ed   : > { %s2124_s22 = scalar_lea.vmem %s2123_s15, 1024  ;;  %p2125_p13 = scmp.lt.s32.totalorder %s2600_s20, %s2123_s15 }
 0x1ee   : > { %p2126_p0 = scmp.lt.s32.totalorder %s2124_s22, %s2118_s24 }
 0x1ef   : > { %1698 = vmatpush3.bf16.msra.mxu1 %v1887_v63 }
 0x1f0   : > { %1723 = vmatprep.subr.bf16.mxu1 %v1896_v39  ;;  %p2127_p2 = por %p2126_p0, %p2125_p13 }
 0x1f2   : > { %p2128_p8 = pnand %p2127_p2, %p2121_p1 }
 0x2a5   : > { %v1661_v42 = vpop.f32.mrb[0].mxu1 }
 0x2a6   : > { %v805_v43 = vadd.f32 %v1661_v42, %v1511_v41  ;;  %v796_v44 = vpop.f32.mrb[1].mxu1  ;;  %v1899_v42 = vld [vmem:[#allocation13 + $0x18] sm:$0xff]  }
 0x2a7   : > { %v797_v45 = vadd.f32 %v1511_v41, %v796_v44  ;;  %v1662_v46 = vpop.f32.mrb[2].mxu1  ;;  %v1901_v44 = vld [vmem:[#allocation13 + $0x28] sm:$0xff]  }
 0x2a8   : > { %v808_v47 = vadd.f32 %v1662_v46, %v1511_v41  ;;  %v799_v48 = vpop.f32.mrb[3].mxu1  ;;  %v813_v50 = vmax.f32 %v805_v43, 0.0  ;;  %v1900_v43 = vld [vmem:[#allocation13 + $0x20] sm:$0xff]  }
 0x2a9   : > { %v800_v49 = vadd.f32 %v1511_v41, %v799_v48  ;;  %v811_v52 = vmax.f32 %v797_v45, 0.0  ;;  %v1898_v41 = vld [vmem:[#allocation13 + $0x10] sm:$0xff]   ;;  %v1529_v45 = vld [vmem:[%s2693_s23] ss:$0 sm:$0xff]  ;;  %s2696_s23 = sld [smem:[#allocation25_spill]] }
 0x2aa   : > { %v814_v51 = vmax.f32 %v808_v47, 0.0 }
 0x2ab   : > { %v812_v53 = vmax.f32 %v800_v49, 0.0 }
 0x2ac   : > { %v816_v54 = vpack.c.bf16 %v814_v51, %v813_v50 }
 0x2ad   : > { %v815_v55 = vpack.c.bf16 %v812_v53, %v811_v52 }
 0x2af   : > { %1679 = vmatprep.mubr.bf16.mxu0 %v815_v55  ;;  %s2605_s18 = scalar_lea.hbm %s2696_s23, %s1562_s1 }
 0x2b0   : > { %1680 = vmatmul.mubr.bf16.vlgmr.msra.gmra.mrb[4].mxu0 %v816_v54 }
 0x2b1   : > { %1704 = vmatpush3.bf16.msra.mxu0 %v1888_v0 }
 0x2b2   : > { %1705 = vmatprep.subr.bf16.mxu0 %v1889_v1 }
 0x2b5   : > { %1706 = vmatpush3.bf16.msra.mxu0 %v1889_v1 }
 0x2b6   : > { %1707 = vmatprep.subr.bf16.mxu0 %v1890_v2 }
 0x2b9   : > { %1708 = vmatpush3.bf16.msra.mxu0 %v1890_v2 }
 0x2ba   : > { %1709 = vmatprep.subr.bf16.mxu0 %v1891_v3 }
 0x2bd   : > { %1710 = vmatpush3.bf16.msra.mxu0 %v1891_v3 }
 0x2be   : > { %1711 = vmatprep.subr.bf16.mxu0 %v1892_v4 }
 0x2c1   : > { %1712 = vmatpush3.bf16.msra.mxu0 %v1892_v4 }
 0x2c2   : > { %1713 = vmatprep.subr.bf16.mxu0 %v1893_v5 }
 0x2c5   : > { %1714 = vmatpush3.bf16.msra.mxu0 %v1893_v5 }
 0x2c6   : > { %1715 = vmatprep.subr.bf16.mxu0 %v1894_v37 }
 0x2c9   : > { %1716 = vmatpush3.bf16.msra.mxu0 %v1894_v37 }
 0x2ca   : > { %1717 = vmatprep.subr.bf16.mxu0 %v1895_v38 }
 0x2cd   : > { %1718 = vmatpush3.bf16.msra.mxu0 %v1895_v38 }
 0x383   : > { %v1681_v7 = vpop.f32.mrb[4].mxu0 }
 0x384   : > { %v931_v8 = vadd.f32 %v1681_v7, %v1520_v6  ;;  %v922_v9 = vpop.f32.mrb[5].mxu0 }
 0x385   : > { %v923_v10 = vadd.f32 %v1520_v6, %v922_v9  ;;  %v1682_v11 = vpop.f32.mrb[6].mxu0 }
 0x386   : > { %v939_v12 = vsub.f32 0.0, %v931_v8  ;;  %v934_v13 = vadd.f32 %v1682_v11, %v1520_v6  ;;  %v925_v14 = vpop.f32.mrb[7].mxu0 }
 0x387   : > { %v937_v15 = vsub.f32 0.0, %v923_v10  ;;  %v926_v16 = vadd.f32 %v1520_v6, %v925_v14 }
 0x388   : > { %v945_v17 = vmul.f32 1.442695, %v939_v12  ;;  %v940_v18 = vsub.f32 0.0, %v934_v13  ;;  %v1547_v13 = vld [vmem:[%s2695_s6] ss:$0 sm:$0xff] }
 0x389   : > { %v941_v19 = vmul.f32 1.442695, %v937_v15  ;;  %v938_v20 = vsub.f32 0.0, %v926_v16 }
 0x38a   : > { %1904 = vpow2.f32 %v945_v17  ;;  %v947_v21 = vmul.f32 1.442695, %v940_v18 }
 0x38b   : > { %1906 = vpow2.f32 %v941_v19  ;;  %v943_v22 = vmul.f32 1.442695, %v938_v20 }
 0x38c   : > { %1908 = vpow2.f32 %v947_v21 }
 0x38d   : > { %1910 = vpow2.f32 %v943_v22 }
 0x394   : > { %v1905_v23 = vpop.eup %1904 }
 0x395   : > { %v1907_v24 = vpop.eup %1906  ;;  %v951_v25 = vadd.f32 1.0, %v1905_v23 }
 0x396   : > { %v1909_v26 = vpop.eup %1908  ;;  %v949_v27 = vadd.f32 1.0, %v1907_v24 }
 0x397   : > { %v1911_v28 = vpop.eup %1910  ;;  %1912 = vrcp.f32 %v951_v25  ;;  %v952_v29 = vadd.f32 1.0, %v1909_v26 }
 0x398   : > { %1914 = vrcp.f32 %v949_v27  ;;  %v950_v30 = vadd.f32 1.0, %v1911_v28 }
 0x399   : > { %1916 = vrcp.f32 %v952_v29 }
 0x39a   : > { %1918 = vrcp.f32 %v950_v30 }
 0x3a1   : > { %v1913_v31 = vpop.eup %1912 }
 0x3a2   : > { %v1915_v32 = vpop.eup %1914 }
 0x3a3   : > { %v1917_v33 = vpop.eup %1916 }
 0x3a4   : > { %v1919_v34 = vpop.eup %1918  ;;  %v958_v35 = vpack.c.bf16 %v1917_v33, %v1913_v31 }
 0x3a5   : > { %v957_v36 = vpack.c.bf16 %v1919_v34, %v1915_v32 }
 0x3a7   : > { %1699 = vmatprep.mubr.bf16.mxu1 %v957_v36 }
 0x3a8   : > { %1700 = vmatmul.mubr.bf16.vlgmr.msra.gmra.mrb[4].mxu1 %v958_v35 }
 0x3a9   : > { %1724 = vmatpush3.bf16.msra.mxu1 %v1896_v39 }
 0x3aa   : > { %1725 = vmatprep.subr.bf16.mxu1 %v1897_v40 }
 0x3ad   : > { %1726 = vmatpush3.bf16.msra.mxu1 %v1897_v40 }
 0x3ae   : > { %1727 = vmatprep.subr.bf16.mxu1 %v1898_v41 }
 0x3b1   : > { %1728 = vmatpush3.bf16.msra.mxu1 %v1898_v41 }
 0x3b2   : > { %1729 = vmatprep.subr.bf16.mxu1 %v1899_v42 }
 0x3b5   : > { %1730 = vmatpush3.bf16.msra.mxu1 %v1899_v42 }
 0x3b6   : > { %1731 = vmatprep.subr.bf16.mxu1 %v1900_v43 }
 0x3b9   : > { %1732 = vmatpush3.bf16.msra.mxu1 %v1900_v43 }
 0x3ba   : > { %1733 = vmatprep.subr.bf16.mxu1 %v1901_v44 }
 0x3bd   : > { %1734 = vmatpush3.bf16.msra.mxu1 %v1901_v44 }
 0x3be   : > { %1735 = vmatprep.subr.bf16.mxu1 %v1902_v60 }
 0x3c1   : > { %1736 = vmatpush3.bf16.msra.mxu1 %v1902_v60 }
 0x3c2   : > { %1737 = vmatprep.subr.bf16.mxu1 %v1903_v61 }
 0x3c5   : > { %1738 = vmatpush3.bf16.msra.mxu1 %v1903_v61 }
 0x47b   : > { %v1701_v46 = vpop.f32.mrb[4].mxu1 }
 0x47c   : > { %v1073_v47 = vadd.f32 %v1701_v46, %v1529_v45  ;;  %v1064_v48 = vpop.f32.mrb[5].mxu1 }
 0x47d   : > { %v1065_v49 = vadd.f32 %v1529_v45, %v1064_v48  ;;  %v1702_v50 = vpop.f32.mrb[6].mxu1 }
 0x47e   : > { %v1076_v51 = vadd.f32 %v1702_v50, %v1529_v45  ;;  %v1067_v52 = vpop.f32.mrb[7].mxu1  ;;  %v1081_v54 = vmax.f32 %v1073_v47, 0.0 }
 0x47f   : > { %v1068_v53 = vadd.f32 %v1529_v45, %v1067_v52  ;;  %v1079_v56 = vmax.f32 %v1065_v49, 0.0 }
 0x480   : > { %v1082_v55 = vmax.f32 %v1076_v51, 0.0 }
 0x481   : > { %v1080_v57 = vmax.f32 %v1068_v53, 0.0 }
 0x482   : > { %v1084_v58 = vpack.c.bf16 %v1082_v55, %v1081_v54 }
 0x483   : > { %v1083_v59 = vpack.c.bf16 %v1080_v57, %v1079_v56 }
 0x485   : > { %1719 = vmatprep.mubr.bf16.mxu0 %v1083_v59 }
 0x486   : > { %1720 = vmatmul.mubr.bf16.vlgmr.msra.gmra.mrb[8].mxu0 %v1084_v58 }
 0x559   : > { %v1721_v63 = vpop.f32.mrb[8].mxu0 }
 0x55a   : > { %v1199_v0 = vadd.f32 %v1721_v63, %v1538_v62  ;;  %v1190_v1 = vpop.f32.mrb[9].mxu0 }
 0x55b   : > { %v1191_v2 = vadd.f32 %v1538_v62, %v1190_v1  ;;  %v1722_v3 = vpop.f32.mrb[10].mxu0 }
 0x55c   : > { %v1202_v4 = vadd.f32 %v1722_v3, %v1538_v62  ;;  %v1193_v5 = vpop.f32.mrb[11].mxu0  ;;  %v1207_v7 = vmax.f32 %v1199_v0, 0.0 }
 0x55d   : > { %v1194_v6 = vadd.f32 %v1538_v62, %v1193_v5  ;;  %v1205_v9 = vmax.f32 %v1191_v2, 0.0 }
 0x55e   : > { %v1208_v8 = vmax.f32 %v1202_v4, 0.0 }
 0x55f   : > { %v1206_v10 = vmax.f32 %v1194_v6, 0.0 }
 0x560   : > { %v1210_v11 = vpack.c.bf16 %v1208_v8, %v1207_v7 }
 0x561   : > { %v1209_v12 = vpack.c.bf16 %v1206_v10, %v1205_v9 }
 0x563   : > { %1739 = vmatprep.mubr.bf16.mxu1 %v1209_v12 }
 0x564   : > { %1740 = vmatmul.mubr.bf16.vlgmr.msra.gmra.mrb[8].mxu1 %v1210_v11 }
 0x637   : > { %v1741_v14 = vpop.f32.mrb[8].mxu1 }
 0x638   : > { %v1325_v15 = vadd.f32 %v1741_v14, %v1547_v13  ;;  %v1316_v16 = vpop.f32.mrb[9].mxu1 }
 0x639   : > { %v1317_v17 = vadd.f32 %v1547_v13, %v1316_v16  ;;  %v1742_v18 = vpop.f32.mrb[10].mxu1 }
 0x63a   : > { %1333 = vst [vmem:[%s545_s10 + $0x10] sm:$0xff] %v1325_v15  ;;  %v1328_v19 = vadd.f32 %v1742_v18, %v1547_v13  ;;  %v1319_v20 = vpop.f32.mrb[11].mxu1 }
 0x63b   : > { %1331 = vst [vmem:[%s545_s10] sm:$0xff] %v1317_v17  ;;  %v1320_v21 = vadd.f32 %v1547_v13, %v1319_v20 }
 0x63c   : > { %1334 = vst [vmem:[%s545_s10 + $0x18] sm:$0xff] %v1328_v19 }
 0x63d   : > { %1332 = vst [vmem:[%s545_s10 + $0x8] sm:$0xff] %v1320_v21 }
 0x63e   : > { %2131 = shalt.err (!%p2128_p8)
}
 0x63f   : > { %s2132_s13 = scalar_lea.hbm %s2605_s18, 512  ;;  %s2136_s1 = scalar_lea.hbm %s2696_s23, 1024 }
 0x640   : > { %p2133_p4 = scmp.ne.s32.totalorder %s2605_s18, %s2132_s13  ;;  %p2137_p3 = scmp.lt.u32.totalorder %s2605_s18, %s2696_s23 }
 0x641   : > { %p2138_p5 = scmp.lt.u32.totalorder %s2136_s1, %s2132_s13  ;;  %p2140_p6 = scmp.lt.u32.totalorder %s2132_s13, %s2605_s18 }
 0x642   : > { %p2134_p10 = pnand %p2133_p4, %p2697_p9 }
 0x643   : > { %p2139_p7 = por %p2138_p5, %p2137_p3 }
 0x644   : > { %p2135_p11 = pneg %p2134_p10 }
 0x645   : > { %p2141_p12 = por %p2140_p6, %p2139_p7 }
 0x647   : > { %p2142_p1 = pnand %p2141_p12, %p2135_p11 }
 0x649   : > { %2145 = shalt.err (!%p2142_p1)
}
 0x64a   : > { %s2208_s24 = smov 128   ;;  %s2209_s21 = smov 8  }
 0x64b   : > { %1769 = dma.vmem_to_hbm [thread:$0]  (%p2697_p9), %s2600_s20, 512, %s2605_s18, %s1336_s14, %s2208_s24, %s2208_s24, %s2209_s21  }
 0x64c PF: > { %s1364_s15 = sand.u32 1, %s2184_s25   ;;  %p2698_p13 = scmp.ne.s32.totalorder %s2682_s19, 0 }
 0x64d   : > { %p2699_p0 = scmp.ge.s32.totalorder %s2196_s28, 2  ;;  %s1365_s22 = scalar_lea.sflag [#allocation4], %s1364_s15 }
 0x64f   : > { %p1795_p2 = pnand %p2699_p0, %p2698_p13 }
 0x651   : > { %2179 = dma.done.wait (!%p1795_p2), %s1365_s22, 512  }
 0x652   : > { %2181 = vsyncadd (!%p1795_p2), %s1365_s22, 4294966784  ;;  %p29_p8 = scmp.ge.s32.totalorder %s2474_s16, 4   ;;  %s2700_s25 = smov %s2188_s26 }
 0x653   : > { %s2701_s26 = smov %s2192_s27  ;;  %s2702_s27 = smov %s2485_s8 }
 0x654   : > { %s2703_s28 = smov %s2474_s16  ;;  %31 = sbr.rel (!%p29_p8) target bundleno = 15 (0xf), region = 141 }
 0x65b   :  { %1370 = vsyncpa [#allocation3], 1 }
 0x65c   :  { %1372 = vsyncpa [#allocation3 + $0x1], 1 }
 0x65d   :  { %1373 = vsyncpa [#allocation6], 1 }
 0x65e   :  { %1374 = vsyncpa [#allocation9], 1 }
 0x65f   :  { %1375 = vsyncpa [#allocation12], 1 }
 0x660   :  { %1376 = vsyncpa [#allocation4], 1 }
 0x661   :  { %1378 = vsyncpa [#allocation4 + $0x1], 1 }

</bundles_post_ra>
